<compile_context>
chip_gen: v6e
topology: v6e:2x2x1
jax: 0.10.0
libtpu: 0.0.40
codegen_flags: <defaults>
</compile_context>

<pallas_src>
import jax
import jax.numpy as jnp
from jax.experimental import pallas as pl
from jax.experimental.pallas import tpu as pltpu

PART = 6


def _round_up(v, m):
    return ((v + m - 1) // m) * m


def pcb_test_kernel(x_ref, wb_ref, bb_ref, wc_ref, sh_ref, o_ref):
    # x_ref : (TN, PART, Hp*W, Cin)   TN samples, channels-last pixels
    # wb_ref: (Cin, Cb_p)             base 1x1 conv weight (Cb padded to 128k)
    # bb_ref: (1, Cb_p)               base 1x1 conv bias
    # wc_ref: (PART, Cb_p, Cm_p)      per-part classifier weight, BN scale folded
    # sh_ref: (PART, 1, Cm_p)         per-part folded BN shift (bias)
    # o_ref : (TN, PART, Cm_p)
    TN, P, HpW, Cin = x_ref.shape
    Cb_p = wb_ref.shape[1]

    # --- backbone: one fused (TN*PART*HpW, Cin) @ (Cin, Cb) matmul ---------
    x2d = x_ref[...].reshape(TN * P * HpW, Cin)
    feat = jnp.dot(x2d, wb_ref[...], preferred_element_type=jnp.float32)
    feat = jnp.maximum(feat + bb_ref[...], 0.0)                 # bias + ReLU

    # --- AdaptiveAvgPool2d((6, 1)): mean over each part's Hp*W pixels ------
    pooled = feat.reshape(TN, P, HpW, Cb_p).mean(axis=2)        # (TN, P, Cb_p)

    # --- per-part classifier, batched over the TN samples ------------------
    for p in range(P):                                          # static unroll
        z = jnp.dot(pooled[:, p, :], wc_ref[p],
                    preferred_element_type=jnp.float32)         # (TN, Cm_p)
        z = jnp.maximum(z + sh_ref[p], 0.0)                     # BN shift + ReLU
        o_ref[:, p, :] = z                                      # direct store


def pcb_test_forward(x, params, *, tn=4):
    """x: (N, Cin, H, W) float32, NCHW (PyTorch convention)."""
    N, Cin, H, W = x.shape
    assert H % PART == 0, "feature-map height must be divisible by 6 parts"
    Hp = H // PART
    HpW = Hp * W
    Cb = params["w_base"].shape[1]
    Cmid = params["w_cls"].shape[2]

    # pad channel dims to lane multiples (zero padding is exact: relu(0)=0 and
    # the padded weight rows/cols are zero).
    Cb_p = _round_up(Cb, 128)
    Cm_p = _round_up(Cmid, 128)

    TN = max(1, min(tn, N))
    N_pad = _round_up(N, TN)

    # NCHW -> (N, PART, Hp*W, Cin): channels-last repack done once by XLA.
    x_parts = jnp.transpose(x, (0, 2, 3, 1)).reshape(N, PART, HpW, Cin)
    if N_pad != N:
        x_parts = jnp.pad(x_parts, ((0, N_pad - N), (0, 0), (0, 0), (0, 0)))

    wb = jnp.pad(params["w_base"], ((0, 0), (0, Cb_p - Cb)))
    bb = jnp.pad(params["b_base"], ((0, Cb_p - Cb),)).reshape(1, Cb_p)

    # fold BatchNorm (eval mode) into the classifier weights + a shift bias.
    eps = 1e-5
    scale = params["bn_gamma"] / jnp.sqrt(params["bn_var"] + eps)    # (PART, Cmid)
    shift = params["bn_beta"] - params["bn_mean"] * scale            # (PART, Cmid)
    wc = params["w_cls"] * scale[:, None, :]                         # (PART, Cb, Cmid)
    wc = jnp.pad(wc, ((0, 0), (0, Cb_p - Cb), (0, Cm_p - Cmid)))
    sh = jnp.pad(shift, ((0, 0), (0, Cm_p - Cmid))).reshape(PART, 1, Cm_p)

    grid = N_pad // TN
    out = pl.pallas_call(
        pcb_test_kernel,
        out_shape=jax.ShapeDtypeStruct((N_pad, PART, Cm_p), jnp.float32),
        grid_spec=pltpu.PrefetchScalarGridSpec(
            num_scalar_prefetch=0,
            grid=(grid,),
            in_specs=[
                pl.BlockSpec((TN, PART, HpW, Cin), lambda n: (n, 0, 0, 0)),
                pl.BlockSpec((Cin, Cb_p), lambda n: (0, 0)),
                pl.BlockSpec((1, Cb_p), lambda n: (0, 0)),
                pl.BlockSpec((PART, Cb_p, Cm_p), lambda n: (0, 0, 0)),
                pl.BlockSpec((PART, 1, Cm_p), lambda n: (0, 0, 0)),
            ],
            out_specs=pl.BlockSpec((TN, PART, Cm_p), lambda n: (n, 0, 0)),
        ),
        compiler_params=pltpu.CompilerParams(
            dimension_semantics=("parallel",)),
    )(x_parts, wb, bb, wc, sh)

    out = out[:N, :, :Cmid]          # drop batch / lane padding
    # PyTorch: cat(parts, dim=2) -> (N, Cmid, 6, 1); f = x.view(N, Cmid, 6)
    return jnp.transpose(out, (0, 2, 1))


def reference_forward(x, params):
    """Plain-JAX reference mirroring the PyTorch forward (featrue_H=True)."""
    N, Cin, H, W = x.shape
    Hp = H // PART
    Cb = params["w_base"].shape[1]
    eps = 1e-5
    # base: 1x1 conv + ReLU (NCHW)
    feat = jnp.einsum("nchw,cb->nbhw", x, params["w_base"]) \
        + params["b_base"][None, :, None, None]
    feat = jnp.maximum(feat, 0.0)
    # AdaptiveAvgPool2d((6, 1))
    pooled = feat.reshape(N, Cb, PART, Hp * W).mean(axis=-1)          # (N, Cb, 6)
    scale = params["bn_gamma"] / jnp.sqrt(params["bn_var"] + eps)     # (6, Cmid)
    shift = params["bn_beta"] - params["bn_mean"] * scale
    parts = []
    for p in range(PART):
        z = pooled[:, :, p] @ params["w_cls"][p]                      # (N, Cmid)
        z = jnp.maximum(z * scale[p] + shift[p], 0.0)
        parts.append(z)
    return jnp.stack(parts, axis=-1)                                  # (N, Cmid, 6)


if __name__ == "__main__":
    key = jax.random.PRNGKey(0)
    N, Cin, H, W = 8, 4, 24, 8        # H = 6 parts * 4 rows; grid = 2 blocks of 4
    Cb, Cmid = 32, 16                 # synthetic backbone / bottleneck widths
    ks = jax.random.split(key, 8)
    x = jax.random.normal(ks[0], (N, Cin, H, W), jnp.float32)
    params = dict(
        w_base=jax.random.normal(ks[1], (Cin, Cb), jnp.float32) * 0.1,
        b_base=jax.random.normal(ks[2], (Cb,), jnp.float32) * 0.1,
        w_cls=jax.random.normal(ks[3], (PART, Cb, Cmid), jnp.float32) * 0.1,
        bn_gamma=jnp.abs(jax.random.normal(ks[4], (PART, Cmid), jnp.float32)) + 0.5,
        bn_beta=jax.random.normal(ks[5], (PART, Cmid), jnp.float32) * 0.1,
        bn_mean=jax.random.normal(ks[6], (PART, Cmid), jnp.float32) * 0.1,
        bn_var=jnp.abs(jax.random.normal(ks[7], (PART, Cmid), jnp.float32)) + 0.5,
    )

    out = pcb_test_forward(x, params, tn=4)
    jax.block_until_ready(out)

    ref = reference_forward(x, params)
    assert out.shape == (N, Cmid, PART), out.shape
    assert jnp.allclose(out, ref, rtol=1e-4, atol=1e-4), "mismatch vs reference"
    print("KERNEL_OK")
</pallas_src>

<mosaic_0001>
module attributes {stable_mosaic.version = 11 : i64} {
  func.func @pcb_test_kernel(%arg0: i32, %arg1: memref<4x6x32x4xf32, #tpu.memory_space<vmem>>, %arg2: memref<4x128xf32, #tpu.memory_space<vmem>>, %arg3: memref<1x128xf32, #tpu.memory_space<vmem>>, %arg4: memref<6x128x128xf32, #tpu.memory_space<vmem>>, %arg5: memref<6x1x128xf32, #tpu.memory_space<vmem>>, %arg6: memref<4x6x128xf32, #tpu.memory_space<vmem>>) attributes {dimension_semantics = [#tpu.dimension_semantics<parallel>], iteration_bounds = array<i64: 2>, scalar_prefetch = 0 : i64, scratch_operands = 0 : i64, tpu.core_type = #tpu.core_type<tc>, window_params = [{transform_indices = @transform_0, window_bounds = array<i64: 4, 6, 32, 4>}, {pipeline_mode = #tpu.pipeline_mode<synchronous>, transform_indices = @transform_1, window_bounds = array<i64: 4, 128>}, {pipeline_mode = #tpu.pipeline_mode<synchronous>, transform_indices = @transform_2, window_bounds = array<i64: 1, 128>}, {pipeline_mode = #tpu.pipeline_mode<synchronous>, transform_indices = @transform_3, window_bounds = array<i64: 6, 128, 128>}, {pipeline_mode = #tpu.pipeline_mode<synchronous>, transform_indices = @transform_4, window_bounds = array<i64: 6, 1, 128>}, {transform_indices = @transform_5, window_bounds = array<i64: 4, 6, 128>}]} {
    %c0 = arith.constant 0 : index
    %c0_0 = arith.constant 0 : index
    %c0_1 = arith.constant 0 : index
    %c0_2 = arith.constant 0 : index
    %0 = vector.load %arg1[%c0, %c0_0, %c0_1, %c0_2] : memref<4x6x32x4xf32, #tpu.memory_space<vmem>>, vector<4x6x32x4xf32>
    %1 = vector.shape_cast %0 : vector<4x6x32x4xf32> to vector<768x4xf32>
    %c0_3 = arith.constant 0 : index
    %c0_4 = arith.constant 0 : index
    %2 = vector.load %arg2[%c0_3, %c0_4] : memref<4x128xf32, #tpu.memory_space<vmem>>, vector<4x128xf32>
    %cst = arith.constant dense<0.000000e+00> : vector<768x128xf32>
    %3 = tpu.matmul %1, %2, %cst {dimension_numbers = #tpu.dot_dimension_numbers<[1], [0], [0], [1], [0, 0, 1, 1], [], []>} : vector<768x4xf32>, vector<4x128xf32>, vector<768x128xf32> -> vector<768x128xf32>
    %c0_5 = arith.constant 0 : index
    %c0_6 = arith.constant 0 : index
    %4 = vector.load %arg3[%c0_5, %c0_6] : memref<1x128xf32, #tpu.memory_space<vmem>>, vector<1x128xf32>
    %5 = vector.broadcast %4 : vector<1x128xf32> to vector<768x128xf32>
    %6 = arith.addf %3, %5 : vector<768x128xf32>
    %cst_7 = arith.constant 0.000000e+00 : f32
    %7 = vector.broadcast %cst_7 : f32 to vector<768x128xf32>
    %8 = arith.maximumf %6, %7 : vector<768x128xf32>
    %9 = vector.shape_cast %8 : vector<768x128xf32> to vector<4x6x32x128xf32>
    %cst_8 = arith.constant dense<0.000000e+00> : vector<4x6x128xf32>
    %10 = vector.multi_reduction <add>, %9, %cst_8 [2] : vector<4x6x32x128xf32> to vector<4x6x128xf32>
    %cst_9 = arith.constant 3.200000e+01 : f32
    %11 = vector.broadcast %cst_9 : f32 to vector<4x6x128xf32>
    %12 = arith.divf %10, %11 : vector<4x6x128xf32>
    %13 = vector.extract_strided_slice %12 {offsets = [0, 0, 0], sizes = [4, 1, 128], strides = [1, 1, 1]} : vector<4x6x128xf32> to vector<4x1x128xf32>
    %14 = vector.shape_cast %13 : vector<4x1x128xf32> to vector<4x128xf32>
    %c0_10 = arith.constant 0 : index
    %c0_11 = arith.constant 0 : index
    %c0_12 = arith.constant 0 : index
    %15 = vector.load %arg4[%c0_10, %c0_11, %c0_12] : memref<6x128x128xf32, #tpu.memory_space<vmem>>, vector<1x128x128xf32>
    %16 = vector.shape_cast %15 : vector<1x128x128xf32> to vector<128x128xf32>
    %cst_13 = arith.constant dense<0.000000e+00> : vector<4x128xf32>
    %17 = tpu.matmul %14, %16, %cst_13 {dimension_numbers = #tpu.dot_dimension_numbers<[1], [0], [0], [1], [0, 0, 1, 1], [], []>} : vector<4x128xf32>, vector<128x128xf32>, vector<4x128xf32> -> vector<4x128xf32>
    %c0_14 = arith.constant 0 : index
    %c0_15 = arith.constant 0 : index
    %c0_16 = arith.constant 0 : index
    %18 = vector.load %arg5[%c0_14, %c0_15, %c0_16] : memref<6x1x128xf32, #tpu.memory_space<vmem>>, vector<1x1x128xf32>
    %19 = vector.shape_cast %18 : vector<1x1x128xf32> to vector<1x128xf32>
    %20 = vector.broadcast %19 : vector<1x128xf32> to vector<4x128xf32>
    %21 = arith.addf %17, %20 : vector<4x128xf32>
    %cst_17 = arith.constant 0.000000e+00 : f32
    %22 = vector.broadcast %cst_17 : f32 to vector<4x128xf32>
    %23 = arith.maximumf %21, %22 : vector<4x128xf32>
    %c0_18 = arith.constant 0 : index
    %c0_19 = arith.constant 0 : index
    %c0_20 = arith.constant 0 : index
    %24 = vector.load %arg6[%c0_18, %c0_19, %c0_20] : memref<4x6x128xf32, #tpu.memory_space<vmem>>, vector<4x1x128xf32>
    %25 = vector.shape_cast %24 : vector<4x1x128xf32> to vector<4x128xf32>
    %26 = vector.shape_cast %23 : vector<4x128xf32> to vector<4x1x128xf32>
    tpu.vector_store %arg6[%c0_18, %c0_19, %c0_20], %26 {strides = array<i32>} : memref<4x6x128xf32, #tpu.memory_space<vmem>>, vector<4x1x128xf32>,
    %27 = vector.extract_strided_slice %12 {offsets = [0, 1, 0], sizes = [4, 1, 128], strides = [1, 1, 1]} : vector<4x6x128xf32> to vector<4x1x128xf32>
    %28 = vector.shape_cast %27 : vector<4x1x128xf32> to vector<4x128xf32>
    %c1 = arith.constant 1 : index
    %c0_21 = arith.constant 0 : index
    %c0_22 = arith.constant 0 : index
    %29 = vector.load %arg4[%c1, %c0_21, %c0_22] : memref<6x128x128xf32, #tpu.memory_space<vmem>>, vector<1x128x128xf32>
    %30 = vector.shape_cast %29 : vector<1x128x128xf32> to vector<128x128xf32>
    %cst_23 = arith.constant dense<0.000000e+00> : vector<4x128xf32>
    %31 = tpu.matmul %28, %30, %cst_23 {dimension_numbers = #tpu.dot_dimension_numbers<[1], [0], [0], [1], [0, 0, 1, 1], [], []>} : vector<4x128xf32>, vector<128x128xf32>, vector<4x128xf32> -> vector<4x128xf32>
    %c1_24 = arith.constant 1 : index
    %c0_25 = arith.constant 0 : index
    %c0_26 = arith.constant 0 : index
    %32 = vector.load %arg5[%c1_24, %c0_25, %c0_26] : memref<6x1x128xf32, #tpu.memory_space<vmem>>, vector<1x1x128xf32>
    %33 = vector.shape_cast %32 : vector<1x1x128xf32> to vector<1x128xf32>
    %34 = vector.broadcast %33 : vector<1x128xf32> to vector<4x128xf32>
    %35 = arith.addf %31, %34 : vector<4x128xf32>
    %cst_27 = arith.constant 0.000000e+00 : f32
    %36 = vector.broadcast %cst_27 : f32 to vector<4x128xf32>
    %37 = arith.maximumf %35, %36 : vector<4x128xf32>
    %c0_28 = arith.constant 0 : index
    %c1_29 = arith.constant 1 : index
    %c0_30 = arith.constant 0 : index
    %38 = vector.load %arg6[%c0_28, %c1_29, %c0_30] : memref<4x6x128xf32, #tpu.memory_space<vmem>>, vector<4x1x128xf32>
    %39 = vector.shape_cast %38 : vector<4x1x128xf32> to vector<4x128xf32>
    %40 = vector.shape_cast %37 : vector<4x128xf32> to vector<4x1x128xf32>
    tpu.vector_store %arg6[%c0_28, %c1_29, %c0_30], %40 {strides = array<i32>} : memref<4x6x128xf32, #tpu.memory_space<vmem>>, vector<4x1x128xf32>,
    %41 = vector.extract_strided_slice %12 {offsets = [0, 2, 0], sizes = [4, 1, 128], strides = [1, 1, 1]} : vector<4x6x128xf32> to vector<4x1x128xf32>
    %42 = vector.shape_cast %41 : vector<4x1x128xf32> to vector<4x128xf32>
    %c2 = arith.constant 2 : index
    %c0_31 = arith.constant 0 : index
    %c0_32 = arith.constant 0 : index
    %43 = vector.load %arg4[%c2, %c0_31, %c0_32] : memref<6x128x128xf32, #tpu.memory_space<vmem>>, vector<1x128x128xf32>
    %44 = vector.shape_cast %43 : vector<1x128x128xf32> to vector<128x128xf32>
    %cst_33 = arith.constant dense<0.000000e+00> : vector<4x128xf32>
    %45 = tpu.matmul %42, %44, %cst_33 {dimension_numbers = #tpu.dot_dimension_numbers<[1], [0], [0], [1], [0, 0, 1, 1], [], []>} : vector<4x128xf32>, vector<128x128xf32>, vector<4x128xf32> -> vector<4x128xf32>
    %c2_34 = arith.constant 2 : index
    %c0_35 = arith.constant 0 : index
    %c0_36 = arith.constant 0 : index
    %46 = vector.load %arg5[%c2_34, %c0_35, %c0_36] : memref<6x1x128xf32, #tpu.memory_space<vmem>>, vector<1x1x128xf32>
    %47 = vector.shape_cast %46 : vector<1x1x128xf32> to vector<1x128xf32>
    %48 = vector.broadcast %47 : vector<1x128xf32> to vector<4x128xf32>
    %49 = arith.addf %45, %48 : vector<4x128xf32>
    %cst_37 = arith.constant 0.000000e+00 : f32
    %50 = vector.broadcast %cst_37 : f32 to vector<4x128xf32>
    %51 = arith.maximumf %49, %50 : vector<4x128xf32>
    %c0_38 = arith.constant 0 : index
    %c2_39 = arith.constant 2 : index
    %c0_40 = arith.constant 0 : index
    %52 = vector.load %arg6[%c0_38, %c2_39, %c0_40] : memref<4x6x128xf32, #tpu.memory_space<vmem>>, vector<4x1x128xf32>
    %53 = vector.shape_cast %52 : vector<4x1x128xf32> to vector<4x128xf32>
    %54 = vector.shape_cast %51 : vector<4x128xf32> to vector<4x1x128xf32>
    tpu.vector_store %arg6[%c0_38, %c2_39, %c0_40], %54 {strides = array<i32>} : memref<4x6x128xf32, #tpu.memory_space<vmem>>, vector<4x1x128xf32>,
    %55 = vector.extract_strided_slice %12 {offsets = [0, 3, 0], sizes = [4, 1, 128], strides = [1, 1, 1]} : vector<4x6x128xf32> to vector<4x1x128xf32>
    %56 = vector.shape_cast %55 : vector<4x1x128xf32> to vector<4x128xf32>
    %c3 = arith.constant 3 : index
    %c0_41 = arith.constant 0 : index
    %c0_42 = arith.constant 0 : index
    %57 = vector.load %arg4[%c3, %c0_41, %c0_42] : memref<6x128x128xf32, #tpu.memory_space<vmem>>, vector<1x128x128xf32>
    %58 = vector.shape_cast %57 : vector<1x128x128xf32> to vector<128x128xf32>
    %cst_43 = arith.constant dense<0.000000e+00> : vector<4x128xf32>
    %59 = tpu.matmul %56, %58, %cst_43 {dimension_numbers = #tpu.dot_dimension_numbers<[1], [0], [0], [1], [0, 0, 1, 1], [], []>} : vector<4x128xf32>, vector<128x128xf32>, vector<4x128xf32> -> vector<4x128xf32>
    %c3_44 = arith.constant 3 : index
    %c0_45 = arith.constant 0 : index
    %c0_46 = arith.constant 0 : index
    %60 = vector.load %arg5[%c3_44, %c0_45, %c0_46] : memref<6x1x128xf32, #tpu.memory_space<vmem>>, vector<1x1x128xf32>
    %61 = vector.shape_cast %60 : vector<1x1x128xf32> to vector<1x128xf32>
    %62 = vector.broadcast %61 : vector<1x128xf32> to vector<4x128xf32>
    %63 = arith.addf %59, %62 : vector<4x128xf32>
    %cst_47 = arith.constant 0.000000e+00 : f32
    %64 = vector.broadcast %cst_47 : f32 to vector<4x128xf32>
    %65 = arith.maximumf %63, %64 : vector<4x128xf32>
    %c0_48 = arith.constant 0 : index
    %c3_49 = arith.constant 3 : index
    %c0_50 = arith.constant 0 : index
    %66 = vector.load %arg6[%c0_48, %c3_49, %c0_50] : memref<4x6x128xf32, #tpu.memory_space<vmem>>, vector<4x1x128xf32>
    %67 = vector.shape_cast %66 : vector<4x1x128xf32> to vector<4x128xf32>
    %68 = vector.shape_cast %65 : vector<4x128xf32> to vector<4x1x128xf32>
    tpu.vector_store %arg6[%c0_48, %c3_49, %c0_50], %68 {strides = array<i32>} : memref<4x6x128xf32, #tpu.memory_space<vmem>>, vector<4x1x128xf32>,
    %69 = vector.extract_strided_slice %12 {offsets = [0, 4, 0], sizes = [4, 1, 128], strides = [1, 1, 1]} : vector<4x6x128xf32> to vector<4x1x128xf32>
    %70 = vector.shape_cast %69 : vector<4x1x128xf32> to vector<4x128xf32>
    %c4 = arith.constant 4 : index
    %c0_51 = arith.constant 0 : index
    %c0_52 = arith.constant 0 : index
    %71 = vector.load %arg4[%c4, %c0_51, %c0_52] : memref<6x128x128xf32, #tpu.memory_space<vmem>>, vector<1x128x128xf32>
    %72 = vector.shape_cast %71 : vector<1x128x128xf32> to vector<128x128xf32>
    %cst_53 = arith.constant dense<0.000000e+00> : vector<4x128xf32>
    %73 = tpu.matmul %70, %72, %cst_53 {dimension_numbers = #tpu.dot_dimension_numbers<[1], [0], [0], [1], [0, 0, 1, 1], [], []>} : vector<4x128xf32>, vector<128x128xf32>, vector<4x128xf32> -> vector<4x128xf32>
    %c4_54 = arith.constant 4 : index
    %c0_55 = arith.constant 0 : index
    %c0_56 = arith.constant 0 : index
    %74 = vector.load %arg5[%c4_54, %c0_55, %c0_56] : memref<6x1x128xf32, #tpu.memory_space<vmem>>, vector<1x1x128xf32>
    %75 = vector.shape_cast %74 : vector<1x1x128xf32> to vector<1x128xf32>
    %76 = vector.broadcast %75 : vector<1x128xf32> to vector<4x128xf32>
    %77 = arith.addf %73, %76 : vector<4x128xf32>
    %cst_57 = arith.constant 0.000000e+00 : f32
    %78 = vector.broadcast %cst_57 : f32 to vector<4x128xf32>
    %79 = arith.maximumf %77, %78 : vector<4x128xf32>
    %c0_58 = arith.constant 0 : index
    %c4_59 = arith.constant 4 : index
    %c0_60 = arith.constant 0 : index
    %80 = vector.load %arg6[%c0_58, %c4_59, %c0_60] : memref<4x6x128xf32, #tpu.memory_space<vmem>>, vector<4x1x128xf32>
    %81 = vector.shape_cast %80 : vector<4x1x128xf32> to vector<4x128xf32>
    %82 = vector.shape_cast %79 : vector<4x128xf32> to vector<4x1x128xf32>
    tpu.vector_store %arg6[%c0_58, %c4_59, %c0_60], %82 {strides = array<i32>} : memref<4x6x128xf32, #tpu.memory_space<vmem>>, vector<4x1x128xf32>,
    %83 = vector.extract_strided_slice %12 {offsets = [0, 5, 0], sizes = [4, 1, 128], strides = [1, 1, 1]} : vector<4x6x128xf32> to vector<4x1x128xf32>
    %84 = vector.shape_cast %83 : vector<4x1x128xf32> to vector<4x128xf32>
    %c5 = arith.constant 5 : index
    %c0_61 = arith.constant 0 : index
    %c0_62 = arith.constant 0 : index
    %85 = vector.load %arg4[%c5, %c0_61, %c0_62] : memref<6x128x128xf32, #tpu.memory_space<vmem>>, vector<1x128x128xf32>
    %86 = vector.shape_cast %85 : vector<1x128x128xf32> to vector<128x128xf32>
    %cst_63 = arith.constant dense<0.000000e+00> : vector<4x128xf32>
    %87 = tpu.matmul %84, %86, %cst_63 {dimension_numbers = #tpu.dot_dimension_numbers<[1], [0], [0], [1], [0, 0, 1, 1], [], []>} : vector<4x128xf32>, vector<128x128xf32>, vector<4x128xf32> -> vector<4x128xf32>
    %c5_64 = arith.constant 5 : index
    %c0_65 = arith.constant 0 : index
    %c0_66 = arith.constant 0 : index
    %88 = vector.load %arg5[%c5_64, %c0_65, %c0_66] : memref<6x1x128xf32, #tpu.memory_space<vmem>>, vector<1x1x128xf32>
    %89 = vector.shape_cast %88 : vector<1x1x128xf32> to vector<1x128xf32>
    %90 = vector.broadcast %89 : vector<1x128xf32> to vector<4x128xf32>
    %91 = arith.addf %87, %90 : vector<4x128xf32>
    %cst_67 = arith.constant 0.000000e+00 : f32
    %92 = vector.broadcast %cst_67 : f32 to vector<4x128xf32>
    %93 = arith.maximumf %91, %92 : vector<4x128xf32>
    %c0_68 = arith.constant 0 : index
    %c5_69 = arith.constant 5 : index
    %c0_70 = arith.constant 0 : index
    %94 = vector.load %arg6[%c0_68, %c5_69, %c0_70] : memref<4x6x128xf32, #tpu.memory_space<vmem>>, vector<4x1x128xf32>
    %95 = vector.shape_cast %94 : vector<4x1x128xf32> to vector<4x128xf32>
    %96 = vector.shape_cast %93 : vector<4x128xf32> to vector<4x1x128xf32>
    tpu.vector_store %arg6[%c0_68, %c5_69, %c0_70], %96 {strides = array<i32>} : memref<4x6x128xf32, #tpu.memory_space<vmem>>, vector<4x1x128xf32>,
    return
  }
  func.func @transform_0(%arg0: i32) -> (i32, i32, i32, i32) {
    %c0_i32 = arith.constant 0 : i32
    %c0_i32_0 = arith.constant 0 : i32
    %c0_i32_1 = arith.constant 0 : i32
    %c0_i32_2 = arith.constant 0 : i32
    return %arg0, %c0_i32, %c0_i32_0, %c0_i32_1 : i32, i32, i32, i32
  }
  func.func @transform_1(%arg0: i32) -> (i32, i32) {
    %c0_i32 = arith.constant 0 : i32
    %c0_i32_0 = arith.constant 0 : i32
    %c0_i32_1 = arith.constant 0 : i32
    return %c0_i32, %c0_i32_0 : i32, i32
  }
  func.func @transform_2(%arg0: i32) -> (i32, i32) {
    %c0_i32 = arith.constant 0 : i32
    %c0_i32_0 = arith.constant 0 : i32
    %c0_i32_1 = arith.constant 0 : i32
    return %c0_i32, %c0_i32_0 : i32, i32
  }
  func.func @transform_3(%arg0: i32) -> (i32, i32, i32) {
    %c0_i32 = arith.constant 0 : i32
    %c0_i32_0 = arith.constant 0 : i32
    %c0_i32_1 = arith.constant 0 : i32
    %c0_i32_2 = arith.constant 0 : i32
    return %c0_i32, %c0_i32_0, %c0_i32_1 : i32, i32, i32
  }
  func.func @transform_4(%arg0: i32) -> (i32, i32, i32) {
    %c0_i32 = arith.constant 0 : i32
    %c0_i32_0 = arith.constant 0 : i32
    %c0_i32_1 = arith.constant 0 : i32
    %c0_i32_2 = arith.constant 0 : i32
    return %c0_i32, %c0_i32_0, %c0_i32_1 : i32, i32, i32
  }
  func.func @transform_5(%arg0: i32) -> (i32, i32, i32) {
    %c0_i32 = arith.constant 0 : i32
    %c0_i32_0 = arith.constant 0 : i32
    %c0_i32_1 = arith.constant 0 : i32
    return %arg0, %c0_i32, %c0_i32_0 : i32, i32, i32
  }
}

</mosaic_0001>

<bundles_post_ra>
// kernel: tpu_custom_call.1
= control target key start
LH: loop header
LB: loop body
LE: loop exit
PB: predicated region body
PF: predicated region fallthrough
CT: control target
= control target key end

     0   :  { %s3210_s18 = smov 0   ;;  %s4093_s0 = inlined_call_operand.vmem [shape: f32[8,6,32,4], index: 0, kind: input, shape index: {}]   ;;  %s4094_s1 = inlined_call_operand.vmem [shape: f32[4,128], index: 1, kind: input, shape index: {}]   ;;  %s4095_s2 = inlined_call_operand.vmem [shape: f32[1,128], index: 2, kind: input, shape index: {}]   ;;  %s4096_s3 = inlined_call_operand.vmem [shape: f32[6,128,128], index: 3, kind: input, shape index: {}]   ;;  %s4097_s4 = inlined_call_operand.vmem [shape: f32[6,1,128], index: 4, kind: input, shape index: {}]   ;;  %s4098_s5 = inlined_call_operand.vmem [shape: f32[8,6,128], index: 5, kind: output, shape index: {}]  }
   0x1 LB: > { %s2389_s19 = sadd.s32 4294967295, %s3175_s18   ;;  %p2393_p0 = scmp.ge.s32.totalorder %s3175_s18, 1  ;;  %s3175_s18 = sphi %s3210_s18, %s15_s18  }
   0x2   : > { %p189_p1 = scmp.lt.s32.totalorder %s3175_s18, 3 }
   0x4   : > { %p190_p2 = pnand %p2393_p0, %p189_p1 }
   0x5   : > { %s2394_s22 = sshll.u32 (!%p190_p2), %s2389_s19, 2 }
   0x6   : > { %193 = sbr.rel (%p190_p2) target bundleno = 749 (0x2ed), region = 40  ;;  %p219_p3 = scmp.lt.s32.totalorder (!%p190_p2), %s2394_s22, 7 }
   0xb   : > { %v327_v0 = vld [vmem:[%s4094_s1] sm:$0xf]  ;;  %vm624_vm0 = vcmask 1043456   ;;  %s4100_s22 = smov (!%p219_p3, %s2394_s22), 7  ;;  %vm335_vm1 = vcmask 31744   ;;  %vm3178_vm2 = vmmov 0  }
   0xc   : > { %2800 = vmatprep.subr.msk.mxu0 %vm624_vm0, %v327_v0  ;;  %s3156_s23 = smul.u32 192, %s4100_s22  ;;  %vm1537_vm3 = vcmask 1041409   ;;  %vm1539_vm4 = vcmask 1042434   ;;  %vm1541_vm5 = vcmask 1043459   ;;  %s2397_s16 = sshll.u32 %s4100_s22, 3 }
   0xd   : > { %2801 = vmatpush3.msk.msra.mxu0 %vm624_vm0, %v327_v0  ;;  %s4031_s20 = scalar_lea.vmem %s4098_s5, %s2397_s16 }
   0xe   : > { %s3227_s26 = scalar_lea.vmem %s4093_s0, %s3156_s23 }
   0xf   : > { %v231_v1 = vld [vmem:[%s3227_s26] sm:$0xff]  ;;  %v232_v2 = vld [vmem:[%s3227_s26 + $0x8] sm:$0xff]  ;;  %v233_v3 = vld [vmem:[%s3227_s26 + $0x10] sm:$0xff] }
  0x10   : > { %2802 = vmatprep.mubr.msk.f32.mxu0 %vm335_vm1, %v231_v1  ;;  %v234_v4 = vld [vmem:[%s3227_s26 + $0x18] sm:$0xff]  ;;  %v235_v5 = vld [vmem:[%s3227_s26 + $0x20] sm:$0xff]  ;;  %v236_v6 = vld [vmem:[%s3227_s26 + $0x28] sm:$0xff] }
  0x11   : > { %2803 = vmatmul.mubr.msk.f32.vlgmr.msra.gmra.mxu0 %vm335_vm1, %v232_v2  ;;  %v237_v7 = vld [vmem:[%s3227_s26 + $0x30] sm:$0xff]  ;;  %v238_v8 = vld [vmem:[%s3227_s26 + $0x38] sm:$0xff]  ;;  %v239_v9 = vld [vmem:[%s3227_s26 + $0x40] sm:$0xff] }
  0x12   : > { %2805 = vmatprep.mubr.msk.f32.mxu0 %vm335_vm1, %v233_v3  ;;  %v240_v10 = vld [vmem:[%s3227_s26 + $0x48] sm:$0xff]  ;;  %v241_v11 = vld [vmem:[%s3227_s26 + $0x50] sm:$0xff]  ;;  %v242_v12 = vld [vmem:[%s3227_s26 + $0x58] sm:$0xff] }
  0x13   : > { %v243_v13 = vld [vmem:[%s3227_s26 + $0x60] sm:$0xff]  ;;  %v244_v14 = vld [vmem:[%s3227_s26 + $0x68] sm:$0xff]  ;;  %v245_v15 = vld [vmem:[%s3227_s26 + $0x70] sm:$0xff] }
  0x14   : > { %v246_v16 = vld [vmem:[%s3227_s26 + $0x78] sm:$0xff]  ;;  %v247_v17 = vld [vmem:[%s3227_s26 + $0x80] sm:$0xff]  ;;  %v248_v18 = vld [vmem:[%s3227_s26 + $0x88] sm:$0xff] }
  0x15   : > { %2806 = vmatmul.mubr.msk.f32.gmra.mxu0 %vm335_vm1, %v234_v4  ;;  %v249_v19 = vld [vmem:[%s3227_s26 + $0x90] sm:$0xff]  ;;  %v250_v20 = vld [vmem:[%s3227_s26 + $0x98] sm:$0xff]  ;;  %v251_v21 = vld [vmem:[%s3227_s26 + $0xa0] sm:$0xff] }
  0x16   : > { %2808 = vmatprep.mubr.msk.f32.mxu0 %vm335_vm1, %v235_v5  ;;  %v252_v22 = vld [vmem:[%s3227_s26 + $0xa8] sm:$0xff]  ;;  %v253_v23 = vld [vmem:[%s3227_s26 + $0xb0] sm:$0xff]  ;;  %v254_v24 = vld [vmem:[%s3227_s26 + $0xb8] sm:$0xff] }
  0x17   : > { %v255_v25 = vld [vmem:[%s3227_s26 + $0xc0] sm:$0xff]  ;;  %v256_v26 = vld [vmem:[%s3227_s26 + $0xc8] sm:$0xff]  ;;  %v257_v27 = vld [vmem:[%s3227_s26 + $0xd0] sm:$0xff] }
  0x18   : > { %v258_v28 = vld [vmem:[%s3227_s26 + $0xd8] sm:$0xff]  ;;  %v259_v29 = vld [vmem:[%s3227_s26 + $0xe0] sm:$0xff]  ;;  %v260_v30 = vld [vmem:[%s3227_s26 + $0xe8] sm:$0xff] }
  0x19   : > { %2809 = vmatmul.mubr.msk.f32.gmra.mxu0 %vm335_vm1, %v236_v6  ;;  %v261_v31 = vld [vmem:[%s3227_s26 + $0xf0] sm:$0xff]  ;;  %v262_v32 = vld [vmem:[%s3227_s26 + $0xf8] sm:$0xff]  ;;  %v263_v33 = vld [vmem:[%s3227_s26 + $0x100] sm:$0xff] }
  0x1a   : > { %2811 = vmatprep.mubr.msk.f32.mxu0 %vm335_vm1, %v237_v7  ;;  %v264_v34 = vld [vmem:[%s3227_s26 + $0x108] sm:$0xff]  ;;  %v265_v35 = vld [vmem:[%s3227_s26 + $0x110] sm:$0xff]  ;;  %v266_v36 = vld [vmem:[%s3227_s26 + $0x118] sm:$0xff] }
  0x1b   : > { %v267_v37 = vld [vmem:[%s3227_s26 + $0x120] sm:$0xff]  ;;  %v268_v38 = vld [vmem:[%s3227_s26 + $0x128] sm:$0xff]  ;;  %v269_v39 = vld [vmem:[%s3227_s26 + $0x130] sm:$0xff] }
  0x1c   : > { %v270_v40 = vld [vmem:[%s3227_s26 + $0x138] sm:$0xff]  ;;  %v271_v41 = vld [vmem:[%s3227_s26 + $0x140] sm:$0xff]  ;;  %v272_v42 = vld [vmem:[%s3227_s26 + $0x148] sm:$0xff] }
  0x1d   : > { %2812 = vmatmul.mubr.msk.f32.gmra.mxu0 %vm335_vm1, %v238_v8  ;;  %v273_v43 = vld [vmem:[%s3227_s26 + $0x150] sm:$0xff]  ;;  %v274_v44 = vld [vmem:[%s3227_s26 + $0x158] sm:$0xff]  ;;  %v275_v45 = vld [vmem:[%s3227_s26 + $0x160] sm:$0xff] }
  0x1e   : > { %2814 = vmatprep.mubr.msk.f32.mxu0 %vm335_vm1, %v239_v9  ;;  %v276_v46 = vld [vmem:[%s3227_s26 + $0x168] sm:$0xff]  ;;  %v277_v47 = vld [vmem:[%s3227_s26 + $0x170] sm:$0xff]  ;;  %v278_v48 = vld [vmem:[%s3227_s26 + $0x178] sm:$0xff] }
  0x1f   : > { %v279_v49 = vld [vmem:[%s3227_s26 + $0x180] sm:$0xff]  ;;  %v280_v50 = vld [vmem:[%s3227_s26 + $0x188] sm:$0xff]  ;;  %v281_v51 = vld [vmem:[%s3227_s26 + $0x190] sm:$0xff] }
  0x20   : > { %v282_v52 = vld [vmem:[%s3227_s26 + $0x198] sm:$0xff]  ;;  %v283_v53 = vld [vmem:[%s3227_s26 + $0x1a0] sm:$0xff]  ;;  %v284_v54 = vld [vmem:[%s3227_s26 + $0x1a8] sm:$0xff] }
  0x21   : > { %2815 = vmatmul.mubr.msk.f32.gmra.mxu0 %vm335_vm1, %v240_v10  ;;  %v285_v55 = vld [vmem:[%s3227_s26 + $0x1b0] sm:$0xff]  ;;  %v286_v56 = vld [vmem:[%s3227_s26 + $0x1b8] sm:$0xff]  ;;  %v287_v57 = vld [vmem:[%s3227_s26 + $0x1c0] sm:$0xff] }
  0x22   : > { %2817 = vmatprep.mubr.msk.f32.mxu0 %vm335_vm1, %v241_v11  ;;  %v288_v58 = vld [vmem:[%s3227_s26 + $0x1c8] sm:$0xff]  ;;  %v289_v59 = vld [vmem:[%s3227_s26 + $0x1d0] sm:$0xff]  ;;  %v290_v60 = vld [vmem:[%s3227_s26 + $0x1d8] sm:$0xff] }
  0x23   : > { %v291_v61 = vld [vmem:[%s3227_s26 + $0x1e0] sm:$0xff]  ;;  %v292_v62 = vld [vmem:[%s3227_s26 + $0x1e8] sm:$0xff]  ;;  %v293_v63 = vld [vmem:[%s3227_s26 + $0x1f0] sm:$0xff] }
  0x24   : > { %v294_v0 = vld [vmem:[%s3227_s26 + $0x1f8] sm:$0xff]  ;;  %v295_v1 = vld [vmem:[%s3227_s26 + $0x200] sm:$0xff]  ;;  %v296_v2 = vld [vmem:[%s3227_s26 + $0x208] sm:$0xff] }
  0x25   : > { %2818 = vmatmul.mubr.msk.f32.gmra.mxu0 %vm335_vm1, %v242_v12  ;;  %v297_v3 = vld [vmem:[%s3227_s26 + $0x210] sm:$0xff]  ;;  %v298_v4 = vld [vmem:[%s3227_s26 + $0x218] sm:$0xff]  ;;  %v299_v5 = vld [vmem:[%s3227_s26 + $0x220] sm:$0xff] }
  0x26   : > { %2820 = vmatprep.mubr.msk.f32.mxu0 %vm335_vm1, %v243_v13  ;;  %v300_v6 = vld [vmem:[%s3227_s26 + $0x228] sm:$0xff]  ;;  %v301_v7 = vld [vmem:[%s3227_s26 + $0x230] sm:$0xff]  ;;  %v302_v8 = vld [vmem:[%s3227_s26 + $0x238] sm:$0xff] }
  0x27   : > { %v303_v9 = vld [vmem:[%s3227_s26 + $0x240] sm:$0xff]  ;;  %v304_v10 = vld [vmem:[%s3227_s26 + $0x248] sm:$0xff]  ;;  %v305_v11 = vld [vmem:[%s3227_s26 + $0x250] sm:$0xff] }
  0x28   : > { %v306_v12 = vld [vmem:[%s3227_s26 + $0x258] sm:$0xff]  ;;  %v307_v13 = vld [vmem:[%s3227_s26 + $0x260] sm:$0xff] }
  0x29   : > { %2821 = vmatmul.mubr.msk.f32.gmra.mxu0 %vm335_vm1, %v244_v14  ;;  %v308_v14 = vld [vmem:[%s3227_s26 + $0x268] sm:$0xff] }
  0x2a   : > { %2823 = vmatprep.mubr.msk.f32.mxu0 %vm335_vm1, %v245_v15  ;;  %v309_v15 = vld [vmem:[%s3227_s26 + $0x270] sm:$0xff] }
  0x2d   : > { %2824 = vmatmul.mubr.msk.f32.gmra.mxu0 %vm335_vm1, %v246_v16  ;;  %v310_v16 = vld [vmem:[%s3227_s26 + $0x278] sm:$0xff] }
  0x2e   : > { %2826 = vmatprep.mubr.msk.f32.mxu0 %vm335_vm1, %v247_v17  ;;  %v311_v17 = vld [vmem:[%s3227_s26 + $0x280] sm:$0xff] }
  0x31   : > { %2827 = vmatmul.mubr.msk.f32.gmra.mxu0 %vm335_vm1, %v248_v18  ;;  %v312_v18 = vld [vmem:[%s3227_s26 + $0x288] sm:$0xff] }
  0x32   : > { %2829 = vmatprep.mubr.msk.f32.mxu0 %vm335_vm1, %v249_v19  ;;  %v313_v19 = vld [vmem:[%s3227_s26 + $0x290] sm:$0xff] }
  0x35   : > { %2830 = vmatmul.mubr.msk.f32.gmra.mxu0 %vm335_vm1, %v250_v20  ;;  %v314_v20 = vld [vmem:[%s3227_s26 + $0x298] sm:$0xff] }
  0x36   : > { %2832 = vmatprep.mubr.msk.f32.mxu0 %vm335_vm1, %v251_v21  ;;  %v315_v21 = vld [vmem:[%s3227_s26 + $0x2a0] sm:$0xff] }
  0x39   : > { %2833 = vmatmul.mubr.msk.f32.gmra.mxu0 %vm335_vm1, %v252_v22  ;;  %v316_v22 = vld [vmem:[%s3227_s26 + $0x2a8] sm:$0xff] }
  0x3a   : > { %2835 = vmatprep.mubr.msk.f32.mxu0 %vm335_vm1, %v253_v23  ;;  %v317_v23 = vld [vmem:[%s3227_s26 + $0x2b0] sm:$0xff] }
  0x3d   : > { %2836 = vmatmul.mubr.msk.f32.gmra.mxu0 %vm335_vm1, %v254_v24  ;;  %v318_v24 = vld [vmem:[%s3227_s26 + $0x2b8] sm:$0xff] }
  0x3e   : > { %2838 = vmatprep.mubr.msk.f32.mxu0 %vm335_vm1, %v255_v25  ;;  %v319_v25 = vld [vmem:[%s3227_s26 + $0x2c0] sm:$0xff] }
  0x41   : > { %2839 = vmatmul.mubr.msk.f32.gmra.mxu0 %vm335_vm1, %v256_v26  ;;  %v320_v26 = vld [vmem:[%s3227_s26 + $0x2c8] sm:$0xff] }
  0x42   : > { %2841 = vmatprep.mubr.msk.f32.mxu0 %vm335_vm1, %v257_v27  ;;  %v321_v27 = vld [vmem:[%s3227_s26 + $0x2d0] sm:$0xff] }
  0x45   : > { %2842 = vmatmul.mubr.msk.f32.gmra.mxu0 %vm335_vm1, %v258_v28  ;;  %v322_v28 = vld [vmem:[%s3227_s26 + $0x2d8] sm:$0xff] }
  0x46   : > { %2844 = vmatprep.mubr.msk.f32.mxu0 %vm335_vm1, %v259_v29  ;;  %v323_v29 = vld [vmem:[%s3227_s26 + $0x2e0] sm:$0xff] }
  0x49   : > { %2845 = vmatmul.mubr.msk.f32.gmra.mxu0 %vm335_vm1, %v260_v30  ;;  %v324_v30 = vld [vmem:[%s3227_s26 + $0x2e8] sm:$0xff] }
  0x4a   : > { %2847 = vmatprep.mubr.msk.f32.mxu0 %vm335_vm1, %v261_v31  ;;  %v325_v31 = vld [vmem:[%s3227_s26 + $0x2f0] sm:$0xff] }
  0x4d   : > { %2848 = vmatmul.mubr.msk.f32.gmra.mxu0 %vm335_vm1, %v262_v32  ;;  %v326_v32 = vld [vmem:[%s3227_s26 + $0x2f8] sm:$0xff] }
  0x4e   : > { %2850 = vmatprep.mubr.msk.f32.mxu0 %vm335_vm1, %v263_v33  ;;  %v3424_v33 = vld [vmem:[%s4095_s2] ss:$0 sm:$0xff] }
  0x51   : > { %2851 = vmatmul.mubr.msk.f32.gmra.mxu0 %vm335_vm1, %v264_v34 }
  0x52   : > { %2853 = vmatprep.mubr.msk.f32.mxu0 %vm335_vm1, %v265_v35 }
  0x55   : > { %2854 = vmatmul.mubr.msk.f32.gmra.mxu0 %vm335_vm1, %v266_v36 }
  0x56   : > { %2856 = vmatprep.mubr.msk.f32.mxu0 %vm335_vm1, %v267_v37 }
  0x59   : > { %2857 = vmatmul.mubr.msk.f32.gmra.mxu0 %vm335_vm1, %v268_v38 }
  0x5a   : > { %2859 = vmatprep.mubr.msk.f32.mxu0 %vm335_vm1, %v269_v39 }
  0x5d   : > { %2860 = vmatmul.mubr.msk.f32.gmra.mxu0 %vm335_vm1, %v270_v40 }
  0x5e   : > { %2862 = vmatprep.mubr.msk.f32.mxu0 %vm335_vm1, %v271_v41 }
  0x61   : > { %2863 = vmatmul.mubr.msk.f32.gmra.mxu0 %vm335_vm1, %v272_v42 }
  0x62   : > { %2865 = vmatprep.mubr.msk.f32.mxu0 %vm335_vm1, %v273_v43 }
  0x65   : > { %2866 = vmatmul.mubr.msk.f32.gmra.mxu0 %vm335_vm1, %v274_v44 }
  0x66   : > { %2868 = vmatprep.mubr.msk.f32.mxu0 %vm335_vm1, %v275_v45 }
  0x69   : > { %2869 = vmatmul.mubr.msk.f32.gmra.mxu0 %vm335_vm1, %v276_v46 }
  0x6a   : > { %2871 = vmatprep.mubr.msk.f32.mxu0 %vm335_vm1, %v277_v47 }
  0x6d   : > { %2872 = vmatmul.mubr.msk.f32.gmra.mxu0 %vm335_vm1, %v278_v48 }
  0x6e   : > { %2874 = vmatprep.mubr.msk.f32.mxu0 %vm335_vm1, %v279_v49 }
  0x71   : > { %2875 = vmatmul.mubr.msk.f32.gmra.mxu0 %vm335_vm1, %v280_v50 }
  0x72   : > { %2877 = vmatprep.mubr.msk.f32.mxu0 %vm335_vm1, %v281_v51 }
  0x75   : > { %2878 = vmatmul.mubr.msk.f32.gmra.mxu0 %vm335_vm1, %v282_v52 }
  0x76   : > { %2880 = vmatprep.mubr.msk.f32.mxu0 %vm335_vm1, %v283_v53 }
  0x79   : > { %2881 = vmatmul.mubr.msk.f32.gmra.mxu0 %vm335_vm1, %v284_v54 }
  0x7a   : > { %2883 = vmatprep.mubr.msk.f32.mxu0 %vm335_vm1, %v285_v55 }
  0x7d   : > { %2884 = vmatmul.mubr.msk.f32.gmra.mxu0 %vm335_vm1, %v286_v56 }
  0x7e   : > { %2886 = vmatprep.mubr.msk.f32.mxu0 %vm335_vm1, %v287_v57  ;;  %v3177_v57 = vmov 0.0  }
  0x7f   : > { %2946 = vmatprep.subr.mxu1 %v3177_v57  ;;  %2978 = vmatprep.mubr.msk.f32.mxu1 %vm3178_vm2, %v3177_v57 }
  0x81   : > { %2887 = vmatmul.mubr.msk.f32.gmra.mxu0 %vm335_vm1, %v288_v58  ;;  %v1525_v58 = vld [vmem:[%s4096_s3 + $0x78] sm:$0xff] }
  0x82   : > { %2889 = vmatprep.mubr.msk.f32.mxu0 %vm335_vm1, %v289_v59  ;;  %2947 = vmatpush3.msra.mxu1 %v1525_v58 }
  0x83   : > { %2948 = vmatprep.subr.mxu1 %v3177_v57 }
  0x85   : > { %2890 = vmatmul.mubr.msk.f32.gmra.mxu0 %vm335_vm1, %v290_v60 }
  0x86   : > { %2892 = vmatprep.mubr.msk.f32.mxu0 %vm335_vm1, %v291_v61 }
  0x89   : > { %2893 = vmatmul.mubr.msk.f32.gmra.mxu0 %vm335_vm1, %v292_v62 }
  0x8a   : > { %2895 = vmatprep.mubr.msk.f32.mxu0 %vm335_vm1, %v293_v63  ;;  %v1524_v63 = vld [vmem:[%s4096_s3 + $0x70] sm:$0xff] }
  0x8b   : > { %2949 = vmatpush3.msra.mxu1 %v1524_v63  ;;  %v1511_v63 = vld [vmem:[%s4096_s3 + $0x8] sm:$0xff] }
  0x8c   : > { %2950 = vmatprep.subr.mxu1 %v3177_v57 }
  0x8d   : > { %2896 = vmatmul.mubr.msk.f32.gmra.mxu0 %vm335_vm1, %v294_v0 }
  0x8e   : > { %2898 = vmatprep.mubr.msk.f32.mxu0 %vm335_vm1, %v295_v1 }
  0x91   : > { %2899 = vmatmul.mubr.msk.f32.gmra.mxu0 %vm335_vm1, %v296_v2 }
  0x92   : > { %2901 = vmatprep.mubr.msk.f32.mxu0 %vm335_vm1, %v297_v3  ;;  %v1523_v3 = vld [vmem:[%s4096_s3 + $0x68] sm:$0xff] }
  0x93   : > { %2951 = vmatpush3.msra.mxu1 %v1523_v3 }
  0x94   : > { %2952 = vmatprep.subr.mxu1 %v3177_v57 }
  0x95   : > { %2902 = vmatmul.mubr.msk.f32.gmra.mxu0 %vm335_vm1, %v298_v4 }
  0x96   : > { %2904 = vmatprep.mubr.msk.f32.mxu0 %vm335_vm1, %v299_v5 }
  0x99   : > { %2905 = vmatmul.mubr.msk.f32.gmra.mxu0 %vm335_vm1, %v300_v6 }
  0x9a   : > { %2907 = vmatprep.mubr.msk.f32.mxu0 %vm335_vm1, %v301_v7 }
  0x9d   : > { %2908 = vmatmul.mubr.msk.f32.gmra.mxu0 %vm335_vm1, %v302_v8  ;;  %v1522_v8 = vld [vmem:[%s4096_s3 + $0x60] sm:$0xff] }
  0x9e   : > { %2910 = vmatprep.mubr.msk.f32.mxu0 %vm335_vm1, %v303_v9  ;;  %2953 = vmatpush3.msra.mxu1 %v1522_v8 }
  0x9f   : > { %2954 = vmatprep.subr.mxu1 %v3177_v57 }
  0xa1   : > { %2911 = vmatmul.mubr.msk.f32.gmra.mxu0 %vm335_vm1, %v304_v10 }
  0xa2   : > { %2913 = vmatprep.mubr.msk.f32.mxu0 %vm335_vm1, %v305_v11 }
  0xa5   : > { %2914 = vmatmul.mubr.msk.f32.gmra.mxu0 %vm335_vm1, %v306_v12 }
  0xa6   : > { %2916 = vmatprep.mubr.msk.f32.mxu0 %vm335_vm1, %v307_v13  ;;  %v1521_v13 = vld [vmem:[%s4096_s3 + $0x58] sm:$0xff] }
  0xa7   : > { %2955 = vmatpush3.msra.mxu1 %v1521_v13 }
  0xa8   : > { %2956 = vmatprep.subr.mxu1 %v3177_v57 }
  0xa9   : > { %2917 = vmatmul.mubr.msk.f32.gmra.mxu0 %vm335_vm1, %v308_v14 }
  0xaa   : > { %2919 = vmatprep.mubr.msk.f32.mxu0 %vm335_vm1, %v309_v15 }
  0xad   : > { %2920 = vmatmul.mubr.msk.f32.gmra.mxu0 %vm335_vm1, %v310_v16 }
  0xae   : > { %2922 = vmatprep.mubr.msk.f32.mxu0 %vm335_vm1, %v311_v17 }
  0xb1   : > { %2923 = vmatmul.mubr.msk.f32.gmra.mxu0 %vm335_vm1, %v312_v18  ;;  %v1520_v18 = vld [vmem:[%s4096_s3 + $0x50] sm:$0xff] }
  0xb2   : > { %2925 = vmatprep.mubr.msk.f32.mxu0 %vm335_vm1, %v313_v19  ;;  %2957 = vmatpush3.msra.mxu1 %v1520_v18 }
  0xb3   : > { %2958 = vmatprep.subr.mxu1 %v3177_v57 }
  0xb5   : > { %2926 = vmatmul.mubr.msk.f32.gmra.mxu0 %vm335_vm1, %v314_v20 }
  0xb6   : > { %2928 = vmatprep.mubr.msk.f32.mxu0 %vm335_vm1, %v315_v21 }
  0xb9   : > { %2929 = vmatmul.mubr.msk.f32.gmra.mxu0 %vm335_vm1, %v316_v22  ;;  %v1519_v22 = vld [vmem:[%s4096_s3 + $0x48] sm:$0xff] }
  0xba   : > { %2931 = vmatprep.mubr.msk.f32.mxu0 %vm335_vm1, %v317_v23  ;;  %2959 = vmatpush3.msra.mxu1 %v1519_v22 }
  0xbb   : > { %2960 = vmatprep.subr.mxu1 %v3177_v57 }
  0xbd   : > { %2932 = vmatmul.mubr.msk.f32.gmra.mxu0 %vm335_vm1, %v318_v24 }
  0xbe   : > { %2934 = vmatprep.mubr.msk.f32.mxu0 %vm335_vm1, %v319_v25 }
  0xc1   : > { %2935 = vmatmul.mubr.msk.f32.gmra.mxu0 %vm335_vm1, %v320_v26 }
  0xc2   : > { %2937 = vmatprep.mubr.msk.f32.mxu0 %vm335_vm1, %v321_v27  ;;  %v1518_v27 = vld [vmem:[%s4096_s3 + $0x40] sm:$0xff] }
  0xc3   : > { %2961 = vmatpush3.msra.mxu1 %v1518_v27 }
  0xc4   : > { %2962 = vmatprep.subr.mxu1 %v3177_v57 }
  0xc5   : > { %2938 = vmatmul.mubr.msk.f32.gmra.mxu0 %vm335_vm1, %v322_v28 }
  0xc6   : > { %2940 = vmatprep.mubr.msk.f32.mxu0 %vm335_vm1, %v323_v29 }
  0xc9   : > { %2941 = vmatmul.mubr.msk.f32.gmra.mxu0 %vm335_vm1, %v324_v30 }
  0xca   : > { %2943 = vmatprep.mubr.msk.f32.mxu0 %vm335_vm1, %v325_v31 }
  0xcd   : > { %2944 = vmatmul.mubr.msk.f32.gmra.mxu0 %vm335_vm1, %v326_v32  ;;  %v1517_v32 = vld [vmem:[%s4096_s3 + $0x38] sm:$0xff] }
  0xce   : > { %2963 = vmatpush3.msra.mxu1 %v1517_v32 }
  0xcf   : > { %2964 = vmatprep.subr.mxu1 %v3177_v57 }
  0xd1   : > { %v2804_v34 = vpop.f32.mrf.mxu0 }
  0xd2   : > { %v700_v35 = vadd.f32 %v2804_v34, %v3424_v33 }
  0xd3   : > { %v694_v36 = vpop.f32.mrf.mxu0 }
  0xd4   : > { %v695_v37 = vadd.f32 %v3424_v33, %v694_v36  ;;  %v1174_v39 = vmax.f32 %v700_v35, 0.0 }
  0xd5   : > { %v2807_v38 = vpop.f32.mrf.mxu0 }
  0xd6   : > { %v1173_v40 = vmax.f32 %v695_v37, 0.0  ;;  %v710_v43 = vadd.f32 %v2807_v38, %v3424_v33  ;;  %v1516_v38 = vld [vmem:[%s4096_s3 + $0x30] sm:$0xff] }
  0xd7   : > { %v704_v41 = vpop.f32.mrf.mxu0  ;;  %2965 = vmatpush3.msra.mxu1 %v1516_v38 }
  0xd8   : > { %v1269_v42 = vadd.f32 %v1174_v39, %v1173_v40  ;;  %v705_v44 = vadd.f32 %v3424_v33, %v704_v41  ;;  %v1176_v49 = vmax.f32 %v710_v43, 0.0  ;;  %2966 = vmatprep.subr.mxu1 %v3177_v57 }
  0xd9   : > { %v2810_v45 = vpop.f32.mrf.mxu0 }
  0xda   : > { %v1175_v46 = vmax.f32 %v705_v44, 0.0  ;;  %v720_v47 = vadd.f32 %v2810_v45, %v3424_v33 }
  0xdb   : > { %v714_v48 = vpop.f32.mrf.mxu0 }
  0xdc   : > { %v1270_v50 = vadd.f32 %v1269_v42, %v1175_v46  ;;  %v715_v51 = vadd.f32 %v3424_v33, %v714_v48  ;;  %v1178_v54 = vmax.f32 %v720_v47, 0.0  ;;  %v1515_v42 = vld [vmem:[%s4096_s3 + $0x28] sm:$0xff]  ;;  %v1514_v47 = vld [vmem:[%s4096_s3 + $0x20] sm:$0xff] }
  0xdd   : > { %v2813_v52 = vpop.f32.mrf.mxu0  ;;  %2967 = vmatpush3.msra.mxu1 %v1515_v42 }
  0xde   : > { %v3432_v53 = vadd.f32 %v1270_v50, %v1176_v49  ;;  %v1177_v55 = vmax.f32 %v715_v51, 0.0  ;;  %v730_v60 = vadd.f32 %v2813_v52, %v3424_v33  ;;  %2968 = vmatprep.subr.mxu1 %v3177_v57  ;;  %v1513_v52 = vld [vmem:[%s4096_s3 + $0x18] sm:$0xff] }
  0xdf   : > { %v724_v56 = vpop.f32.mrf.mxu0  ;;  %2969 = vmatpush3.msra.mxu1 %v1514_v47 }
  0xe0   : > { %v1278_v59 = vadd.f32 %v1178_v54, %v1177_v55  ;;  %v725_v61 = vadd.f32 %v3424_v33, %v724_v56  ;;  %v1180_v4 = vmax.f32 %v730_v60, 0.0  ;;  %2970 = vmatprep.subr.mxu1 %v3177_v57 }
  0xe1   : > { %v2816_v62 = vpop.f32.mrf.mxu0  ;;  %2971 = vmatpush3.msra.mxu1 %v1513_v52 }
  0xe2   : > { %v1179_v0 = vmax.f32 %v725_v61, 0.0  ;;  %v740_v1 = vadd.f32 %v2816_v62, %v3424_v33  ;;  %2972 = vmatprep.subr.mxu1 %v3177_v57 }
  0xe3   : > { %v734_v2 = vpop.f32.mrf.mxu0 }
  0xe4   : > { %v1279_v5 = vadd.f32 %v1278_v59, %v1179_v0  ;;  %v735_v6 = vadd.f32 %v3424_v33, %v734_v2  ;;  %v1182_v10 = vmax.f32 %v740_v1, 0.0  ;;  %v1512_v59 = vld [vmem:[%s4096_s3 + $0x10] sm:$0xff] }
  0xe5   : > { %v2819_v7 = vpop.f32.mrf.mxu0  ;;  %2973 = vmatpush3.msra.mxu1 %v1512_v59 }
  0xe6   : > { %v3454_v9 = vadd.f32 %v1279_v5, %v1180_v4  ;;  %v1181_v11 = vmax.f32 %v735_v6, 0.0  ;;  %v750_v15 = vadd.f32 %v2819_v7, %v3424_v33  ;;  %2974 = vmatprep.subr.mxu1 %v3177_v57  ;;  %v1510_v4 = vld [vmem:[%s4096_s3] sm:$0xff] }
  0xe7   : > { %v744_v12 = vpop.f32.mrf.mxu0  ;;  %2975 = vmatpush3.msra.mxu1 %v1511_v63 }
  0xe8   : > { %v1287_v14 = vadd.f32 %v1182_v10, %v1181_v11  ;;  %v745_v16 = vadd.f32 %v3424_v33, %v744_v12  ;;  %v1184_v24 = vmax.f32 %v750_v15, 0.0  ;;  %2976 = vmatprep.subr.mxu1 %v3177_v57  ;;  %v1272_v15 = vrot.slane %v3432_v53, 4 }
  0xe9   : > { %v2822_v17 = vpop.f32.mrf.mxu0  ;;  %2977 = vmatpush3.msra.mxu1 %v1510_v4 }
  0xea   : > { %v760_v19 = vadd.f32 %v2822_v17, %v3424_v33  ;;  %v1183_v20 = vmax.f32 %v745_v16, 0.0  ;;  %2981 = vmatprep.subr.mxu1 %v3177_v57 }
  0xeb   : > { %v754_v21 = vpop.f32.mrf.mxu0 }
  0xec   : > { %v755_v23 = vadd.f32 %v3424_v33, %v754_v21  ;;  %v1288_v25 = vadd.f32 %v1287_v14, %v1183_v20  ;;  %v1186_v28 = vmax.f32 %v760_v19, 0.0 }
  0xed   : > { %v2825_v26 = vpop.f32.mrf.mxu0 }
  0xee   : > { %v1185_v29 = vmax.f32 %v755_v23, 0.0  ;;  %v3476_v30 = vadd.f32 %v1288_v25, %v1184_v24  ;;  %v770_v35 = vadd.f32 %v2825_v26, %v3424_v33  ;;  %v1273_v24 = vadd.f32 %v1272_v15, %v3432_v53 }
  0xef   : > { %v764_v31 = vpop.f32.mrf.mxu0 }
  0xf0   : > { %v1296_v34 = vadd.f32 %v1186_v28, %v1185_v29  ;;  %v765_v36 = vadd.f32 %v3424_v33, %v764_v31  ;;  %v1188_v43 = vmax.f32 %v770_v35, 0.0  ;;  %v1274_v35 = vrot.slane %v1273_v24, 2 }
  0xf1   : > { %v2828_v37 = vpop.f32.mrf.mxu0 }
  0xf2   : > { %v1187_v39 = vmax.f32 %v765_v36, 0.0  ;;  %v780_v40 = vadd.f32 %v2828_v37, %v3424_v33  ;;  %v1281_v36 = vrot.slane %v3454_v9, 4 }
  0xf3   : > { %v774_v41 = vpop.f32.mrf.mxu0 }
  0xf4   : > { %v1297_v44 = vadd.f32 %v1296_v34, %v1187_v39  ;;  %v775_v45 = vadd.f32 %v3424_v33, %v774_v41  ;;  %v1190_v49 = vmax.f32 %v780_v40, 0.0 }
  0xf5   : > { %v2831_v46 = vpop.f32.mrf.mxu0 }
  0xf6   : > { %v3498_v48 = vadd.f32 %v1297_v44, %v1188_v43  ;;  %v1189_v50 = vmax.f32 %v775_v45, 0.0  ;;  %v790_v55 = vadd.f32 %v2831_v46, %v3424_v33  ;;  %v1275_v44 = vadd.f32 %v1274_v35, %v1273_v24 }
  0xf7   : > { %v784_v51 = vpop.f32.mrf.mxu0  ;;  %v1282_v45 = vadd.f32 %v1281_v36, %v3454_v9 }
  0xf8   : > { %v1305_v54 = vadd.f32 %v1190_v49, %v1189_v50  ;;  %v785_v56 = vadd.f32 %v3424_v33, %v784_v51  ;;  %v1192_v0 = vmax.f32 %v790_v55, 0.0 }
  0xf9   : > { %v2834_v58 = vpop.f32.mrf.mxu0  ;;  %v1283_v59 = vrot.slane %v1282_v45, 2 }
  0xfa   : > { %v1191_v60 = vmax.f32 %v785_v56, 0.0  ;;  %v800_v61 = vadd.f32 %v2834_v58, %v3424_v33  ;;  %v1276_v58 = vrot.slane %v1275_v44, 1 }
  0xfb   : > { %v794_v62 = vpop.f32.mrf.mxu0 }
  0xfc   : > { %v1306_v1 = vadd.f32 %v1305_v54, %v1191_v60  ;;  %v795_v2 = vadd.f32 %v3424_v33, %v794_v62  ;;  %v1194_v6 = vmax.f32 %v800_v61, 0.0 }
  0xfd   : > { %v2837_v3 = vpop.f32.mrf.mxu0 }
  0xfe   : > { %v3520_v5 = vadd.f32 %v1306_v1, %v1192_v0  ;;  %v1193_v7 = vmax.f32 %v795_v2, 0.0  ;;  %v810_v11 = vadd.f32 %v2837_v3, %v3424_v33  ;;  %v1290_v0 = vrot.slane %v3476_v30, 4 }
  0xff   : > { %v804_v8 = vpop.f32.mrf.mxu0 }
 0x100   : > { %v1314_v10 = vadd.f32 %v1194_v6, %v1193_v7  ;;  %v805_v12 = vadd.f32 %v3424_v33, %v804_v8  ;;  %v1196_v19 = vmax.f32 %v810_v11, 0.0  ;;  %v1284_v7 = vadd.f32 %v1283_v59, %v1282_v45 }
 0x101   : > { %v2840_v13 = vpop.f32.mrf.mxu0 }
 0x102   : > { %v820_v14 = vadd.f32 %v2840_v13, %v3424_v33  ;;  %v1195_v16 = vmax.f32 %v805_v12, 0.0 }
 0x103   : > { %v814_v17 = vpop.f32.mrf.mxu0 }
 0x104   : > { %v815_v18 = vadd.f32 %v3424_v33, %v814_v17  ;;  %v1315_v20 = vadd.f32 %v1314_v10, %v1195_v16  ;;  %v1198_v22 = vmax.f32 %v820_v14, 0.0  ;;  %v1277_v10 = vadd.f32 %v1276_v58, %v1275_v44 }
 0x105   : > { %v2843_v21 = vpop.f32.mrf.mxu0  ;;  %v1291_v14 = vadd.f32 %v1290_v0, %v3476_v30 }
 0x106   : > { %v1197_v23 = vmax.f32 %v815_v18, 0.0  ;;  %v3531_v25 = vadd.f32 %v1315_v20, %v1196_v19  ;;  %v830_v28 = vadd.f32 %v2843_v21, %v3424_v33  ;;  %v1285_v21 = vrot.slane %v1284_v7, 1 }
 0x107   : > { %v824_v26 = vpop.f32.mrf.mxu0 }
 0x108   : > { %v1323_v27 = vadd.f32 %v1198_v22, %v1197_v23  ;;  %v825_v29 = vadd.f32 %v3424_v33, %v824_v26  ;;  %v1200_v38 = vmax.f32 %v830_v28, 0.0  ;;  %v1299_v22 = vrot.slane %v3498_v48, 4 }
 0x109   : > { %v2846_v31 = vpop.f32.mrf.mxu0  ;;  %v1486_v28 = vmul.f32 0.03125, %v1277_v10 }
 0x10a   : > { %v1199_v32 = vmax.f32 %v825_v29, 0.0  ;;  %v840_v34 = vadd.f32 %v2846_v31, %v3424_v33  ;;  %v1292_v29 = vrot.slane %v1291_v14, 2 }
 0x10b   : > { %v834_v37 = vpop.f32.mrf.mxu0 }
 0x10c   : > { %v1324_v39 = vadd.f32 %v1323_v27, %v1199_v32  ;;  %v835_v53 = vadd.f32 %v3424_v33, %v834_v37  ;;  %v1202_v42 = vmax.f32 %v840_v34, 0.0 }
 0x10d   : > { %v2849_v40 = vpop.f32.mrf.mxu0 }
 0x10e   : > { %v1325_v41 = vadd.f32 %v1324_v39, %v1200_v38  ;;  %v1201_v43 = vmax.f32 %v835_v53, 0.0  ;;  %v850_v50 = vadd.f32 %v2849_v40, %v3424_v33  ;;  %v1286_v39 = vadd.f32 %v1285_v21, %v1284_v7 }
 0x10f   : > { %v844_v46 = vpop.f32.mrf.mxu0  ;;  %v1300_v53 = vadd.f32 %v1299_v22, %v3498_v48 }
 0x110   : > { %v1326_v47 = vrot.slane %v1325_v41, 4  ;;  %v1332_v49 = vadd.f32 %v1202_v42, %v1201_v43  ;;  %v845_v51 = vadd.f32 %v3424_v33, %v844_v46  ;;  %v1204_v62 = vmax.f32 %v850_v50, 0.0 }
 0x111   : > { %v2852_v52 = vpop.f32.mrf.mxu0  ;;  %v1293_v46 = vadd.f32 %v1292_v29, %v1291_v14  ;;  %v1317_v29 = vrot.slane %v3531_v25, 4 }
 0x112   : > { %v1327_v54 = vadd.f32 %v1326_v47, %v1325_v41  ;;  %v1203_v55 = vmax.f32 %v845_v51, 0.0  ;;  %v860_v56 = vadd.f32 %v2852_v52, %v3424_v33 }
 0x113   : > { %v854_v60 = vpop.f32.mrf.mxu0 }
 0x114   : > { %v1328_v61 = vrot.slane %v1327_v54, 2  ;;  %v1333_v63 = vadd.f32 %v1332_v49, %v1203_v55  ;;  %v855_v9 = vadd.f32 %v3424_v33, %v854_v60  ;;  %v1206_v4 = vmax.f32 %v860_v56, 0.0 }
 0x115   : > { %v2855_v1 = vpop.f32.mrf.mxu0  ;;  %v1301_v55 = vrot.slane %v1300_v53, 2  ;;  %v1308_v56 = vrot.slane %v3520_v5, 4 }
 0x116   : > { %v1329_v2 = vadd.f32 %v1328_v61, %v1327_v54  ;;  %v1334_v3 = vadd.f32 %v1333_v63, %v1204_v62  ;;  %v1205_v6 = vmax.f32 %v855_v9, 0.0  ;;  %v870_v15 = vadd.f32 %v2855_v1, %v3424_v33 }
 0x117   : > { %v864_v8 = vpop.f32.mrf.mxu0  ;;  %v1487_v54 = vmul.f32 0.03125, %v1286_v39  ;;  %v1294_v63 = vrot.slane %v1293_v46, 1  ;;  %v1309_v7 = vadd.f32 %v1308_v56, %v3520_v5 }
 0x118   : > { %v1330_v11 = vrot.slane %v1329_v2, 1  ;;  %v1335_v12 = vrot.slane %v1334_v3, 4  ;;  %v1341_v13 = vadd.f32 %v1206_v4, %v1205_v6  ;;  %v865_v16 = vadd.f32 %v3424_v33, %v864_v8 }
 0x119   : > { %v2858_v17 = vpop.f32.mrf.mxu0  ;;  %v1208_v31 = vmax.f32 %v870_v15, 0.0  ;;  %v1302_v6 = vadd.f32 %v1301_v55, %v1300_v53  ;;  %v1295_v15 = vadd.f32 %v1294_v63, %v1293_v46  ;;  %v1310_v22 = vrot.slane %v1309_v7, 2 }
 0x11a   : > { %v1331_v18 = vadd.f32 %v1330_v11, %v1329_v2  ;;  %v1336_v19 = vadd.f32 %v1335_v12, %v1334_v3  ;;  %v880_v20 = vadd.f32 %v2858_v17, %v3424_v33  ;;  %v1207_v23 = vmax.f32 %v865_v16, 0.0 }
 0x11b   : > { %v874_v24 = vpop.f32.mrf.mxu0  ;;  %v1303_v21 = vrot.slane %v1302_v6, 1 }
 0x11c   : > { %v1337_v26 = vrot.slane %v1336_v19, 2  ;;  %v875_v27 = vadd.f32 %v3424_v33, %v874_v24  ;;  %v1492_v30 = vmul.f32 0.03125, %v1331_v18  ;;  %v1342_v32 = vadd.f32 %v1341_v13, %v1207_v23 }
 0x11d   : > { %v2861_v34 = vpop.f32.mrf.mxu0  ;;  %v1210_v36 = vmax.f32 %v880_v20, 0.0  ;;  %v1304_v39 = vadd.f32 %v1303_v21, %v1302_v6 }
 0x11e   : > { %v1338_v35 = vadd.f32 %v1337_v26, %v1336_v19  ;;  %v1209_v37 = vmax.f32 %v875_v27, 0.0  ;;  %v3551_v38 = vsel %vm1537_vm3, %v1492_v30, %v1486_v28  ;;  %v1343_v40 = vadd.f32 %v1342_v32, %v1208_v31 }
 0x11f   : > { %v884_v41 = vpop.f32.mrf.mxu0  ;;  %v890_v44 = vadd.f32 %v2861_v34, %v3424_v33  ;;  %v1488_v30 = vmul.f32 0.03125, %v1295_v15  ;;  %v1489_v55 = vmul.f32 0.03125, %v1304_v39 }
 0x120   : > { %v1339_v42 = vrot.slane %v1338_v35, 1  ;;  %v1350_v43 = vadd.f32 %v1210_v36, %v1209_v37  ;;  %v885_v45 = vadd.f32 %v3424_v33, %v884_v41  ;;  %v1344_v47 = vrot.slane %v1343_v40, 4 }
 0x121   : > { %v2864_v49 = vpop.f32.mrf.mxu0  ;;  %v1212_v60 = vmax.f32 %v890_v44, 0.0  ;;  %v1311_v41 = vadd.f32 %v1310_v22, %v1309_v7 }
 0x122   : > { %v1340_v50 = vadd.f32 %v1339_v42, %v1338_v35  ;;  %v1211_v51 = vmax.f32 %v885_v45, 0.0  ;;  %v900_v52 = vadd.f32 %v2864_v49, %v3424_v33  ;;  %v1345_v48 = vadd.f32 %v1344_v47, %v1343_v40 }
 0x123   : > { %v894_v58 = vpop.f32.mrf.mxu0  ;;  %v1318_v45 = vadd.f32 %v1317_v29, %v3531_v25  ;;  %v1312_v56 = vrot.slane %v1311_v41, 1 }
 0x124   : > { %v1493_v59 = vmul.f32 0.03125, %v1340_v50  ;;  %v1351_v61 = vadd.f32 %v1350_v43, %v1211_v51  ;;  %v895_v62 = vadd.f32 %v3424_v33, %v894_v58  ;;  %v1346_v9 = vrot.slane %v1345_v48, 2 }
 0x125   : > { %v2867_v0 = vpop.f32.mrf.mxu0  ;;  %v1214_v2 = vmax.f32 %v900_v52, 0.0 }
 0x126   : > { %v1352_v1 = vadd.f32 %v1351_v61, %v1212_v60  ;;  %v1213_v3 = vmax.f32 %v895_v62, 0.0  ;;  %v3560_v4 = vsel %vm1537_vm3, %v1493_v59, %v1487_v54  ;;  %v1347_v8 = vadd.f32 %v1346_v9, %v1345_v48 }
 0x127   : > { %v904_v10 = vpop.f32.mrf.mxu0  ;;  %v910_v13 = vadd.f32 %v2867_v0, %v3424_v33  ;;  %v1319_v59 = vrot.slane %v1318_v45, 2 }
 0x128   : > { %v1353_v11 = vrot.slane %v1352_v1, 4  ;;  %v1359_v12 = vadd.f32 %v1214_v2, %v1213_v3  ;;  %v905_v14 = vadd.f32 %v3424_v33, %v904_v10  ;;  %v1348_v16 = vrot.slane %v1347_v8, 1 }
 0x129   : > { %v2870_v17 = vpop.f32.mrf.mxu0  ;;  %v1216_v26 = vmax.f32 %v910_v13, 0.0  ;;  %v1320_v3 = vadd.f32 %v1319_v59, %v1318_v45 }
 0x12a   : > { %v1354_v18 = vadd.f32 %v1353_v11, %v1352_v1  ;;  %v1215_v19 = vmax.f32 %v905_v14, 0.0  ;;  %v920_v20 = vadd.f32 %v2870_v17, %v3424_v33  ;;  %v1349_v23 = vadd.f32 %v1348_v16, %v1347_v8 }
 0x12b   : > { %v914_v24 = vpop.f32.mrf.mxu0  ;;  %v1313_v1 = vadd.f32 %v1312_v56, %v1311_v41  ;;  %v1321_v16 = vrot.slane %v1320_v3, 1 }
 0x12c   : > { %v1355_v5 = vrot.slane %v1354_v18, 2  ;;  %v1360_v27 = vadd.f32 %v1359_v12, %v1215_v19  ;;  %v915_v28 = vadd.f32 %v3424_v33, %v914_v24  ;;  %v1494_v31 = vmul.f32 0.03125, %v1349_v23 }
 0x12d   : > { %v2873_v32 = vpop.f32.mrf.mxu0  ;;  %v1218_v36 = vmax.f32 %v920_v20, 0.0  ;;  %v1490_v13 = vmul.f32 0.03125, %v1313_v1 }
 0x12e   : > { %v1356_v34 = vadd.f32 %v1355_v5, %v1354_v18  ;;  %v1361_v35 = vadd.f32 %v1360_v27, %v1216_v26  ;;  %v1217_v37 = vmax.f32 %v915_v28, 0.0  ;;  %v3569_v40 = vsel %vm1537_vm3, %v1494_v31, %v1488_v30 }
 0x12f   : > { %v924_v53 = vpop.f32.mrf.mxu0  ;;  %v930_v46 = vadd.f32 %v2873_v32, %v3424_v33  ;;  %v1322_v27 = vadd.f32 %v1321_v16, %v1320_v3 }
 0x130   : > { %v1357_v42 = vrot.slane %v1356_v34, 1  ;;  %v1362_v43 = vrot.slane %v1361_v35, 4  ;;  %v1368_v44 = vadd.f32 %v1218_v36, %v1217_v37  ;;  %v925_v47 = vadd.f32 %v3424_v33, %v924_v53 }
 0x131   : > { %v3574_v49 = vpop.f32.mrf.mxu0  ;;  %v1220_v60 = vmax.f32 %v930_v46, 0.0  ;;  %v1491_v39 = vmul.f32 0.03125, %v1322_v27 }
 0x132   : > { %v1358_v50 = vadd.f32 %v1357_v42, %v1356_v34  ;;  %v1363_v51 = vadd.f32 %v1362_v43, %v1361_v35  ;;  %v1219_v52 = vmax.f32 %v925_v47, 0.0 }
 0x133   : > { %v3576_v54 = vpop.f32.mrf.mxu0 }
 0x134   : > { %v1495_v48 = vmul.f32 0.03125, %v1358_v50  ;;  %v1364_v58 = vrot.slane %v1363_v51, 2  ;;  %v1369_v61 = vadd.f32 %v1368_v44, %v1219_v52 }
 0x135   : > { %v3578_v62 = vpop.f32.mrf.mxu0 }
 0x136   : > { %v1365_v25 = vadd.f32 %v1364_v58, %v1363_v51  ;;  %v3581_v63 = vsel %vm1537_vm3, %v1495_v48, %v1489_v55  ;;  %v1370_v9 = vadd.f32 %v1369_v61, %v1220_v60 }
 0x137   : > { %v3583_v0 = vpop.f32.mrf.mxu0 }
 0x138   : > { %v1366_v2 = vrot.slane %v1365_v25, 1  ;;  %v1371_v6 = vrot.slane %v1370_v9, 4 }
 0x139   : > { %v2882_v7 = vpop.f32.mrf.mxu0 }
 0x13a   : > { %v1367_v8 = vadd.f32 %v1366_v2, %v1365_v25  ;;  %v960_v10 = vadd.f32 %v2882_v7, %v3424_v33  ;;  %v1372_v11 = vadd.f32 %v1371_v6, %v1370_v9 }
 0x13b   : > { %v954_v12 = vpop.f32.mrf.mxu0 }
 0x13c   : > { %v1496_v14 = vmul.f32 0.03125, %v1367_v8  ;;  %v955_v15 = vadd.f32 %v3424_v33, %v954_v12  ;;  %v1373_v17 = vrot.slane %v1372_v11, 2  ;;  %v1226_v19 = vmax.f32 %v960_v10, 0.0 }
 0x13d   : > { %v2885_v18 = vpop.f32.mrf.mxu0  ;;  %v935_v8 = vadd.f32 %v3424_v33, %v3576_v54 }
 0x13e   : > { %v1225_v20 = vmax.f32 %v955_v15, 0.0  ;;  %v3588_v21 = vsel %vm1537_vm3, %v1496_v14, %v1490_v13  ;;  %v1374_v22 = vadd.f32 %v1373_v17, %v1372_v11  ;;  %v970_v5 = vadd.f32 %v2885_v18, %v3424_v33 }
 0x13f   : > { %v964_v23 = vpop.f32.mrf.mxu0  ;;  %v940_v14 = vadd.f32 %v3574_v49, %v3424_v33  ;;  %v945_v15 = vadd.f32 %v3424_v33, %v3583_v0  ;;  %v1221_v54 = vmax.f32 %v935_v8, 0.0 }
 0x140   : > { %v1386_v24 = vadd.f32 %v1226_v19, %v1225_v20  ;;  %v965_v26 = vadd.f32 %v3424_v33, %v964_v23  ;;  %v1375_v28 = vrot.slane %v1374_v22, 1  ;;  %v1228_v35 = vmax.f32 %v970_v5, 0.0 }
 0x141   : > { %v2888_v30 = vpop.f32.mrf.mxu0  ;;  %v1222_v27 = vmax.f32 %v940_v14, 0.0 }
 0x142   : > { %v1227_v29 = vmax.f32 %v965_v26, 0.0  ;;  %v980_v31 = vadd.f32 %v2888_v30, %v3424_v33  ;;  %v1376_v32 = vadd.f32 %v1375_v28, %v1374_v22  ;;  %v1223_v28 = vmax.f32 %v945_v15, 0.0 }
 0x143   : > { %v974_v34 = vpop.f32.mrf.mxu0 }
 0x144   : > { %v1387_v36 = vadd.f32 %v1386_v24, %v1227_v29  ;;  %v975_v37 = vadd.f32 %v3424_v33, %v974_v34  ;;  %v1497_v53 = vmul.f32 0.03125, %v1376_v32  ;;  %v1230_v43 = vmax.f32 %v980_v31, 0.0 }
 0x145   : > { %v2891_v41 = vpop.f32.mrf.mxu0 }
 0x146   : > { %v1388_v42 = vadd.f32 %v1387_v36, %v1228_v35  ;;  %v1229_v44 = vmax.f32 %v975_v37, 0.0  ;;  %v3595_v46 = vsel %vm1537_vm3, %v1497_v53, %v1491_v39  ;;  %v990_v51 = vadd.f32 %v2891_v41, %v3424_v33 }
 0x147   : > { %v984_v45 = vpop.f32.mrf.mxu0  ;;  %v1377_v36 = vadd.f32 %v1222_v27, %v1221_v54  ;;  %v950_v37 = vadd.f32 %v3578_v62, %v3424_v33 }
 0x148   : > { %v1389_v47 = vrot.slane %v1388_v42, 4  ;;  %v1395_v50 = vadd.f32 %v1230_v43, %v1229_v44  ;;  %v985_v52 = vadd.f32 %v3424_v33, %v984_v45  ;;  %v1232_v61 = vmax.f32 %v990_v51, 0.0 }
 0x149   : > { %v2894_v55 = vpop.f32.mrf.mxu0  ;;  %v1378_v45 = vadd.f32 %v1377_v36, %v1223_v28 }
 0x14a   : > { %v1390_v56 = vadd.f32 %v1389_v47, %v1388_v42  ;;  %v1231_v48 = vmax.f32 %v985_v52, 0.0  ;;  %v1000_v58 = vadd.f32 %v2894_v55, %v3424_v33  ;;  %v1224_v55 = vmax.f32 %v950_v37, 0.0 }
 0x14b   : > { %v994_v59 = vpop.f32.mrf.mxu0 }
 0x14c   : > { %v1391_v60 = vrot.slane %v1390_v56, 2  ;;  %v1396_v25 = vadd.f32 %v1395_v50, %v1231_v48  ;;  %v995_v9 = vadd.f32 %v3424_v33, %v994_v59  ;;  %v1234_v6 = vmax.f32 %v1000_v58, 0.0 }
 0x14d   : > { %v2897_v1 = vpop.f32.mrf.mxu0 }
 0x14e   : > { %v1392_v2 = vadd.f32 %v1391_v60, %v1390_v56  ;;  %v1397_v3 = vadd.f32 %v1396_v25, %v1232_v61  ;;  %v1233_v7 = vmax.f32 %v995_v9, 0.0  ;;  %v1010_v16 = vadd.f32 %v2897_v1, %v3424_v33 }
 0x14f   : > { %v1004_v10 = vpop.f32.mrf.mxu0  ;;  %v1379_v61 = vadd.f32 %v1378_v45, %v1224_v55 }
 0x150   : > { %v1393_v11 = vrot.slane %v1392_v2, 1  ;;  %v1398_v12 = vrot.slane %v1397_v3, 4  ;;  %v1404_v13 = vadd.f32 %v1234_v6, %v1233_v7  ;;  %v1005_v17 = vadd.f32 %v3424_v33, %v1004_v10 }
 0x151   : > { %v2900_v18 = vpop.f32.mrf.mxu0  ;;  %v1236_v0 = vmax.f32 %v1010_v16, 0.0  ;;  %v1380_v16 = vrot.slane %v1379_v61, 4 }
 0x152   : > { %v1399_v19 = vadd.f32 %v1398_v12, %v1397_v3  ;;  %v1020_v20 = vadd.f32 %v2900_v18, %v3424_v33  ;;  %v1394_v22 = vadd.f32 %v1393_v11, %v1392_v2  ;;  %v1235_v23 = vmax.f32 %v1005_v17, 0.0 }
 0x153   : > { %v1014_v24 = vpop.f32.mrf.mxu0 }
 0x154   : > { %v1400_v5 = vrot.slane %v1399_v19, 2  ;;  %v1015_v26 = vadd.f32 %v3424_v33, %v1014_v24  ;;  %v1499_v49 = vmul.f32 0.03125, %v1394_v22  ;;  %v1405_v30 = vadd.f32 %v1404_v13, %v1235_v23 }
 0x155   : > { %v2903_v29 = vpop.f32.mrf.mxu0  ;;  %v1238_v32 = vmax.f32 %v1020_v20, 0.0 }
 0x156   : > { %v1401_v31 = vadd.f32 %v1400_v5, %v1399_v19  ;;  %v1237_v34 = vmax.f32 %v1015_v26, 0.0  ;;  %v3613_v35 = vsel %vm1539_vm4, %v1499_v49, %v3560_v4  ;;  %v1406_v39 = vadd.f32 %v1405_v30, %v1236_v0 }
 0x157   : > { %v1024_v53 = vpop.f32.mrf.mxu0  ;;  %v1030_v43 = vadd.f32 %v2903_v29, %v3424_v33  ;;  %v1381_v49 = vadd.f32 %v1380_v16, %v1379_v61 }
 0x158   : > { %v1402_v41 = vrot.slane %v1401_v31, 1  ;;  %v1413_v42 = vadd.f32 %v1238_v32, %v1237_v34  ;;  %v1025_v44 = vadd.f32 %v3424_v33, %v1024_v53  ;;  %v1407_v47 = vrot.slane %v1406_v39, 4 }
 0x159   : > { %v2906_v50 = vpop.f32.mrf.mxu0  ;;  %v1240_v58 = vmax.f32 %v1030_v43, 0.0  ;;  %v1382_v53 = vrot.slane %v1381_v49, 2 }
 0x15a   : > { %v1239_v51 = vmax.f32 %v1025_v44, 0.0  ;;  %v1040_v52 = vadd.f32 %v2906_v50, %v3424_v33  ;;  %v1403_v4 = vadd.f32 %v1402_v41, %v1401_v31  ;;  %v1408_v56 = vadd.f32 %v1407_v47, %v1406_v39 }
 0x15b   : > { %v1034_v48 = vpop.f32.mrf.mxu0 }
 0x15c   : > { %v1414_v62 = vadd.f32 %v1413_v42, %v1239_v51  ;;  %v1035_v59 = vadd.f32 %v3424_v33, %v1034_v48  ;;  %v1500_v60 = vmul.f32 0.03125, %v1403_v4  ;;  %v1409_v25 = vrot.slane %v1408_v56, 2 }
 0x15d   : > { %v2909_v9 = vpop.f32.mrf.mxu0  ;;  %v1242_v2 = vmax.f32 %v1040_v52, 0.0  ;;  %v1383_v4 = vadd.f32 %v1382_v53, %v1381_v49 }
 0x15e   : > { %v1415_v1 = vadd.f32 %v1414_v62, %v1240_v58  ;;  %v1241_v3 = vmax.f32 %v1035_v59, 0.0  ;;  %v3623_v6 = vsel %vm1539_vm4, %v1500_v60, %v3569_v40  ;;  %v1410_v7 = vadd.f32 %v1409_v25, %v1408_v56 }
 0x15f   : > { %v1044_v8 = vpop.f32.mrf.mxu0  ;;  %v1050_v12 = vadd.f32 %v2909_v9, %v3424_v33 }
 0x160   : > { %v1416_v10 = vrot.slane %v1415_v1, 4  ;;  %v1422_v11 = vadd.f32 %v1242_v2, %v1241_v3  ;;  %v1045_v13 = vadd.f32 %v3424_v33, %v1044_v8  ;;  %v1411_v14 = vrot.slane %v1410_v7, 1 }
 0x161   : > { %v2912_v15 = vpop.f32.mrf.mxu0  ;;  %v1244_v54 = vmax.f32 %v1050_v12, 0.0 }
 0x162   : > { %v1417_v17 = vadd.f32 %v1416_v10, %v1415_v1  ;;  %v1243_v18 = vmax.f32 %v1045_v13, 0.0  ;;  %v1412_v20 = vadd.f32 %v1411_v14, %v1410_v7  ;;  %v1060_v24 = vadd.f32 %v2912_v15, %v3424_v33 }
 0x163   : > { %v1054_v19 = vpop.f32.mrf.mxu0  ;;  %v1384_v1 = vrot.slane %v1383_v4, 1 }
 0x164   : > { %v1418_v22 = vrot.slane %v1417_v17, 2  ;;  %v1423_v23 = vadd.f32 %v1422_v11, %v1243_v18  ;;  %v1055_v40 = vadd.f32 %v3424_v33, %v1054_v19  ;;  %v1501_v26 = vmul.f32 0.03125, %v1412_v20 }
 0x165   : > { %v2915_v5 = vpop.f32.mrf.mxu0  ;;  %v1246_v34 = vmax.f32 %v1060_v24, 0.0  ;;  %v1385_v18 = vadd.f32 %v1384_v1, %v1383_v4 }
 0x166   : > { %v1419_v27 = vadd.f32 %v1418_v22, %v1417_v17  ;;  %v1424_v28 = vadd.f32 %v1423_v23, %v1244_v54  ;;  %v1245_v0 = vmax.f32 %v1055_v40, 0.0  ;;  %v3631_v29 = vsel %vm1539_vm4, %v1501_v26, %v3581_v63 }
 0x167   : > { %v1064_v30 = vpop.f32.mrf.mxu0  ;;  %v1070_v36 = vadd.f32 %v2915_v5, %v3424_v33 }
 0x168   : > { %v1420_v31 = vrot.slane %v1419_v27, 1  ;;  %v1425_v32 = vrot.slane %v1424_v28, 4  ;;  %v1065_v37 = vadd.f32 %v3424_v33, %v1064_v30  ;;  %v1431_v43 = vadd.f32 %v1246_v34, %v1245_v0 }
 0x169   : > { %v2918_v39 = vpop.f32.mrf.mxu0  ;;  %v1248_v51 = vmax.f32 %v1070_v36, 0.0  ;;  %v1498_v30 = vmul.f32 0.03125, %v1385_v18 }
 0x16a   : > { %v1426_v41 = vadd.f32 %v1425_v32, %v1424_v28  ;;  %v1421_v42 = vadd.f32 %v1420_v31, %v1419_v27  ;;  %v1247_v44 = vmax.f32 %v1065_v37, 0.0  ;;  %v1080_v58 = vadd.f32 %v2918_v39, %v3424_v33  ;;  %v3655_v39 = vld [vmem:[%s4095_s2] ss:$0 sm:$0xff] }
 0x16b   : > { %v1074_v45 = vpop.f32.mrf.mxu0 }
 0x16c   : > { %v1427_v47 = vrot.slane %v1426_v41, 2  ;;  %v1502_v50 = vmul.f32 0.03125, %v1421_v42  ;;  %v1432_v52 = vadd.f32 %v1431_v43, %v1247_v44  ;;  %v1075_v62 = vadd.f32 %v3424_v33, %v1074_v45 }
 0x16d   : > { %v2921_v63 = vpop.f32.mrf.mxu0  ;;  %v1250_v7 = vmax.f32 %v1080_v58, 0.0  ;;  %v1540_v45 = vsel %vm1539_vm4, %v1498_v30, %v3551_v38 }
 0x16e   : > { %v1428_v55 = vadd.f32 %v1427_v47, %v1426_v41  ;;  %v3637_v56 = vsel %vm1539_vm4, %v1502_v50, %v3588_v21  ;;  %v1433_v48 = vadd.f32 %v1432_v52, %v1248_v51  ;;  %v1249_v8 = vmax.f32 %v1075_v62, 0.0  ;;  %v2514_v47 = vld [vmem:[%s4096_s3 + $0xf8] sm:$0xff] }
 0x16f   : > { %v1084_v59 = vpop.f32.mrf.mxu0  ;;  %v1090_v22 = vadd.f32 %v2921_v63, %v3424_v33 }
 0x170   : > { %v1429_v60 = vrot.slane %v1428_v55, 1  ;;  %v1434_v61 = vrot.slane %v1433_v48, 4  ;;  %v1085_v10 = vadd.f32 %v3424_v33, %v1084_v59  ;;  %v1440_v20 = vadd.f32 %v1250_v7, %v1249_v8  ;;  %v2511_v8 = vld [vmem:[%s4096_s3 + $0xe0] sm:$0xff] }
 0x171   : > { %v2924_v25 = vpop.f32.mrf.mxu0  ;;  %v1252_v31 = vmax.f32 %v1090_v22, 0.0  ;;  %v2509_v22 = vld [vmem:[%s4096_s3 + $0xd0] sm:$0xff] }
 0x172   : > { %v1100_v9 = vadd.f32 %v2924_v25, %v3424_v33  ;;  %v1430_v2 = vadd.f32 %v1429_v60, %v1428_v55  ;;  %v1435_v3 = vadd.f32 %v1434_v61, %v1433_v48  ;;  %v1251_v54 = vmax.f32 %v1085_v10, 0.0  ;;  %v2513_v48 = vld [vmem:[%s4096_s3 + $0xf0] sm:$0xff]  ;;  %v2512_v61 = vld [vmem:[%s4096_s3 + $0xe8] sm:$0xff] }
 0x173   : > { %v1094_v21 = vpop.f32.mrf.mxu0 }
 0x174   : > { %v1254_v11 = vmax.f32 %v1100_v9, 0.0  ;;  %v1095_v12 = vadd.f32 %v3424_v33, %v1094_v21  ;;  %v1503_v13 = vmul.f32 0.03125, %v1430_v2  ;;  %v1436_v14 = vrot.slane %v1435_v3, 2 }
 0x175   : > { %v2927_v15 = vpop.f32.mrf.mxu0  ;;  %v1441_v32 = vadd.f32 %v1440_v20, %v1251_v54 }
 0x176   : > { %v1253_v16 = vmax.f32 %v1095_v12, 0.0  ;;  %v1110_v17 = vadd.f32 %v2927_v15, %v3424_v33  ;;  %v3647_v19 = vsel %vm1539_vm4, %v1503_v13, %v3595_v46  ;;  %v1437_v40 = vadd.f32 %v1436_v14, %v1435_v3  ;;  %v2510_v14 = vld [vmem:[%s4096_s3 + $0xd8] sm:$0xff] }
 0x177   : > { %v1104_v23 = vpop.f32.mrf.mxu0  ;;  %v1442_v50 = vadd.f32 %v1441_v32, %v1252_v31 }
 0x178   : > { %v1449_v24 = vadd.f32 %v1254_v11, %v1253_v16  ;;  %v1105_v5 = vadd.f32 %v3424_v33, %v1104_v23  ;;  %v1438_v49 = vrot.slane %v1437_v40, 1  ;;  %v1256_v27 = vmax.f32 %v1110_v17, 0.0 }
 0x179   : > { %v2930_v26 = vpop.f32.mrf.mxu0  ;;  %v1443_v25 = vrot.slane %v1442_v50, 4 }
 0x17a   : > { %v1255_v28 = vmax.f32 %v1105_v5, 0.0  ;;  %v1120_v0 = vadd.f32 %v2930_v26, %v3424_v33  ;;  %v1439_v34 = vadd.f32 %v1438_v49, %v1437_v40  ;;  %v2508_v49 = vld [vmem:[%s4096_s3 + $0xc8] sm:$0xff] }
 0x17b   : > { %v1114_v46 = vpop.f32.mrf.mxu0  ;;  %v1444_v15 = vadd.f32 %v1443_v25, %v1442_v50 }
 0x17c   : > { %v1450_v36 = vadd.f32 %v1449_v24, %v1255_v28  ;;  %v1258_v37 = vmax.f32 %v1120_v0, 0.0  ;;  %v1115_v53 = vadd.f32 %v3655_v39, %v1114_v46  ;;  %v1504_v42 = vmul.f32 0.03125, %v1439_v34  ;;  %v2507_v34 = vld [vmem:[%s4096_s3 + $0xc0] sm:$0xff] }
 0x17d   : > { %v2933_v41 = vpop.f32.mrf.mxu0 }
 0x17e   : > { %v1451_v43 = vadd.f32 %v1450_v36, %v1256_v27  ;;  %v1257_v44 = vmax.f32 %v1115_v53, 0.0  ;;  %v1130_v33 = vadd.f32 %v3655_v39, %v2933_v41  ;;  %v1542_v52 = vsel %vm1541_vm5, %v1504_v42, %v1540_v45 }
 0x17f   : > { %v1124_v51 = vpop.f32.mrf.mxu0  ;;  %2979 = vmatmul.mubr.f32.vlgmr.msra.gmra.mxu1 %v1542_v52  ;;  %v1445_v27 = vrot.slane %v1444_v15, 2 }
 0x180   : > { %v1452_v63 = vrot.slane %v1451_v43, 4  ;;  %v1458_v4 = vadd.f32 %v1258_v37, %v1257_v44  ;;  %v1125_v55 = vadd.f32 %v3655_v39, %v1124_v51  ;;  %2982 = vmatpush3.msra.mxu1 %v2514_v47  ;;  %3013 = vmatprep.mubr.msk.f32.mxu1 %vm3178_vm2, %v3177_v57  ;;  %v1260_v62 = vmax.f32 %v1130_v33, 0.0  ;;  %v2506_v44 = vld [vmem:[%s4096_s3 + $0xb8] sm:$0xff] }
 0x181   : > { %v2936_v58 = vpop.f32.mrf.mxu0  ;;  %2983 = vmatprep.subr.mxu1 %v3177_v57  ;;  %v1446_v33 = vadd.f32 %v1445_v27, %v1444_v15  ;;  %v2526_v27 = vld [vmem:[%s4096_s3 + $0x138] sm:$0xff] }
 0x182   : > { %v1453_v38 = vadd.f32 %v1452_v63, %v1451_v43  ;;  %v1259_v59 = vmax.f32 %v1125_v55, 0.0  ;;  %v1140_v60 = vadd.f32 %v3655_v39, %v2936_v58  ;;  %2984 = vmatpush3.msra.mxu1 %v2513_v48  ;;  %v2505_v63 = vld [vmem:[%s4096_s3 + $0xb0] sm:$0xff] }
 0x183   : > { %v1134_v9 = vpop.f32.mrf.mxu0  ;;  %2985 = vmatprep.subr.mxu1 %v3177_v57 }
 0x184   : > { %v1454_v1 = vrot.slane %v1453_v38, 2  ;;  %v1459_v2 = vadd.f32 %v1458_v4, %v1259_v59  ;;  %v1262_v3 = vmax.f32 %v1140_v60, 0.0  ;;  %v1135_v7 = vadd.f32 %v3655_v39, %v1134_v9  ;;  %2986 = vmatpush3.msra.mxu1 %v2512_v61  ;;  %v2503_v60 = vld [vmem:[%s4096_s3 + $0xa0] sm:$0xff] }
 0x185   : > { %v2939_v10 = vpop.f32.mrf.mxu0  ;;  %2987 = vmatprep.subr.mxu1 %v3177_v57 }
 0x186   : > { %v1455_v21 = vadd.f32 %v1454_v1, %v1453_v38  ;;  %v1460_v11 = vadd.f32 %v1459_v2, %v1260_v62  ;;  %v1261_v12 = vmax.f32 %v1135_v7, 0.0  ;;  %v1150_v13 = vadd.f32 %v3655_v39, %v2939_v10  ;;  %2988 = vmatpush3.msra.mxu1 %v2511_v8  ;;  %v2502_v1 = vld [vmem:[%s4096_s3 + $0x98] sm:$0xff]  ;;  %v2501_v8 = vld [vmem:[%s4096_s3 + $0x90] sm:$0xff] }
 0x187   : > { %v1144_v16 = vpop.f32.mrf.mxu0  ;;  %2989 = vmatprep.subr.mxu1 %v3177_v57  ;;  %v1447_v38 = vrot.slane %v1446_v33, 1 }
 0x188   : > { %v1461_v17 = vrot.slane %v1460_v11, 4  ;;  %v1467_v18 = vadd.f32 %v1262_v3, %v1261_v12  ;;  %v1145_v20 = vadd.f32 %v3655_v39, %v1144_v16  ;;  %2990 = vmatpush3.msra.mxu1 %v2510_v14  ;;  %v1456_v23 = vrot.slane %v1455_v21, 1  ;;  %v2499_v14 = vld [vmem:[%s4096_s3 + $0x80] sm:$0xff] }
 0x189   : > { %v2942_v54 = vpop.f32.mrf.mxu0  ;;  %v1264_v24 = vmax.f32 %v1150_v13, 0.0  ;;  %2991 = vmatprep.subr.mxu1 %v3177_v57  ;;  %v1448_v2 = vadd.f32 %v1447_v38, %v1446_v33  ;;  %v2547_v33 = vld [vmem:[%s4096_s3 + $0x1c0] sm:$0xff] }
 0x18a   : > { %v1462_v40 = vadd.f32 %v1461_v17, %v1460_v11  ;;  %v1263_v5 = vmax.f32 %v1145_v20, 0.0  ;;  %v1160_v26 = vadd.f32 %v3655_v39, %v2942_v54  ;;  %2992 = vmatpush3.msra.mxu1 %v2509_v22  ;;  %v1457_v0 = vadd.f32 %v1456_v23, %v1455_v21  ;;  %v2500_v11 = vld [vmem:[%s4096_s3 + $0x88] sm:$0xff]  ;;  %v2534_v17 = vld [vmem:[%s4096_s3 + $0x178] sm:$0xff]  ;;  %v2533_v22 = vld [vmem:[%s4096_s3 + $0x170] sm:$0xff] }
 0x18b   : > { %v1154_v28 = vpop.f32.mrf.mxu0  ;;  %2993 = vmatprep.subr.mxu1 %v3177_v57  ;;  %v2571_v38 = vld [vmem:[%s4096_s3 + $0x260] sm:$0xff] }
 0x18c   : > { %v1463_v30 = vrot.slane %v1462_v40, 2  ;;  %v1468_v31 = vadd.f32 %v1467_v18, %v1263_v5  ;;  %v1266_v32 = vmax.f32 %v1160_v26, 0.0  ;;  %v1155_v46 = vadd.f32 %v3655_v39, %v1154_v28  ;;  %2994 = vmatpush3.msra.mxu1 %v2508_v49  ;;  %v2529_v26 = vld [vmem:[%s4096_s3 + $0x150] sm:$0xff]  ;;  %v2528_v49 = vld [vmem:[%s4096_s3 + $0x148] sm:$0xff] }
 0x18d   : > { %v2945_v36 = vpop.f32.mrf.mxu0  ;;  %v1506_v37 = vmul.f32 0.03125, %v1457_v0  ;;  %2995 = vmatprep.subr.mxu1 %v3177_v57  ;;  %v2525_v28 = vld [vmem:[%s4096_s3 + $0x130] sm:$0xff]  ;;  %v2524_v0 = vld [vmem:[%s4096_s3 + $0x128] sm:$0xff] }
 0x18e   : > { %v1464_v53 = vadd.f32 %v1463_v30, %v1462_v40  ;;  %v1469_v41 = vadd.f32 %v1468_v31, %v1264_v24  ;;  %v1265_v42 = vmax.f32 %v1155_v46, 0.0  ;;  %v1170_v43 = vadd.f32 %v3655_v39, %v2945_v36  ;;  %2996 = vmatpush3.msra.mxu1 %v2507_v34  ;;  %v2530_v24 = vld [vmem:[%s4096_s3 + $0x158] sm:$0xff]  ;;  %v2523_v30 = vld [vmem:[%s4096_s3 + $0x120] sm:$0xff]  ;;  %v2520_v46 = vld [vmem:[%s4096_s3 + $0x108] sm:$0xff] }
 0x18f   : > { %v1164_v45 = vpop.f32.mrf.mxu0  ;;  %v3708_v47 = vsel %vm1541_vm5, %v1506_v37, %v3623_v6  ;;  %2997 = vmatprep.subr.mxu1 %v3177_v57  ;;  %v2504_v6 = vld [vmem:[%s4096_s3 + $0xa8] sm:$0xff]  ;;  %v2522_v31 = vld [vmem:[%s4096_s3 + $0x118] sm:$0xff]  ;;  %v2519_v34 = vld [vmem:[%s4096_s3 + $0x100] sm:$0xff] }
 0x190   : > { %v1470_v50 = vrot.slane %v1469_v41, 4  ;;  %v1476_v51 = vadd.f32 %v1266_v32, %v1265_v42  ;;  %v1165_v52 = vadd.f32 %v3655_v39, %v1164_v45  ;;  %2998 = vmatpush3.msra.mxu1 %v2506_v44  ;;  %v1465_v4 = vrot.slane %v1464_v53, 1  ;;  %v2521_v32 = vld [vmem:[%s4096_s3 + $0x110] sm:$0xff]  ;;  %v2554_v36 = vld [vmem:[%s4096_s3 + $0x1f8] sm:$0xff]  ;;  %v2548_v44 = vld [vmem:[%s4096_s3 + $0x1c8] sm:$0xff] }
 0x191   : > { %v1268_v48 = vmax.f32 %v1170_v43, 0.0  ;;  %2999 = vmatprep.subr.mxu1 %v3177_v57  ;;  %v2553_v37 = vld [vmem:[%s4096_s3 + $0x1f0] sm:$0xff]  ;;  %v2550_v42 = vld [vmem:[%s4096_s3 + $0x1d8] sm:$0xff] }
 0x192   : > { %v1471_v55 = vadd.f32 %v1470_v50, %v1469_v41  ;;  %v1267_v58 = vmax.f32 %v1165_v52, 0.0  ;;  %3000 = vmatpush3.msra.mxu1 %v2505_v63  ;;  %v1466_v62 = vadd.f32 %v1465_v4, %v1464_v53  ;;  %v2552_v53 = vld [vmem:[%s4096_s3 + $0x1e8] sm:$0xff]  ;;  %v2551_v41 = vld [vmem:[%s4096_s3 + $0x1e0] sm:$0xff]  ;;  %v2549_v43 = vld [vmem:[%s4096_s3 + $0x1d0] sm:$0xff] }
 0x193   : > { %3001 = vmatprep.subr.mxu1 %v3177_v57  ;;  %v2546_v45 = vld [vmem:[%s4096_s3 + $0x1b8] sm:$0xff]  ;;  %v2544_v50 = vld [vmem:[%s4096_s3 + $0x1a8] sm:$0xff]  ;;  %v2541_v63 = vld [vmem:[%s4096_s3 + $0x190] sm:$0xff] }
 0x194   : > { %v1472_v59 = vrot.slane %v1471_v55, 2  ;;  %v1477_v39 = vadd.f32 %v1476_v51, %v1267_v58  ;;  %3002 = vmatpush3.msra.mxu1 %v2504_v6  ;;  %v1507_v61 = vmul.f32 0.03125, %v1466_v62  ;;  %v2543_v51 = vld [vmem:[%s4096_s3 + $0x1a0] sm:$0xff]  ;;  %v2542_v52 = vld [vmem:[%s4096_s3 + $0x198] sm:$0xff]  ;;  %v2540_v4 = vld [vmem:[%s4096_s3 + $0x188] sm:$0xff] }
 0x195   : > { %3003 = vmatprep.subr.mxu1 %v3177_v57  ;;  %v2573_v58 = vld [vmem:[%s4096_s3 + $0x270] sm:$0xff]  ;;  %v2572_v6 = vld [vmem:[%s4096_s3 + $0x268] sm:$0xff]  ;;  %v2570_v62 = vld [vmem:[%s4096_s3 + $0x258] sm:$0xff] }
 0x196   : > { %v1473_v25 = vadd.f32 %v1472_v59, %v1471_v55  ;;  %v1478_v9 = vadd.f32 %v1477_v39, %v1268_v48  ;;  %3004 = vmatpush3.msra.mxu1 %v2503_v60  ;;  %v3729_v3 = vsel %vm1541_vm5, %v1507_v61, %v3631_v29  ;;  %v1505_v29 = vmul.f32 0.03125, %v1448_v2  ;;  %v2539_v55 = vld [vmem:[%s4096_s3 + $0x180] sm:$0xff]  ;;  %v2574_v48 = vld [vmem:[%s4096_s3 + $0x278] sm:$0xff]  ;;  %v2569_v59 = vld [vmem:[%s4096_s3 + $0x250] sm:$0xff] }
 0x197   : > { %3005 = vmatprep.subr.mxu1 %v3177_v57  ;;  %v2568_v39 = vld [vmem:[%s4096_s3 + $0x248] sm:$0xff]  ;;  %v2567_v60 = vld [vmem:[%s4096_s3 + $0x240] sm:$0xff]  ;;  %v2566_v61 = vld [vmem:[%s4096_s3 + $0x238] sm:$0xff] }
 0x198   : > { %v1479_v7 = vrot.slane %v1478_v9, 4  ;;  %v1474_v10 = vrot.slane %v1473_v25, 1  ;;  %3006 = vmatpush3.msra.mxu1 %v2502_v1  ;;  %v1679_v20 = vsel %vm1541_vm5, %v1505_v29, %v3613_v35  ;;  %v2531_v35 = vld [vmem:[%s4096_s3 + $0x160] sm:$0xff]  ;;  %v2562_v2 = vld [vmem:[%s4096_s3 + $0x218] sm:$0xff] }
 0x199   : > { %3007 = vmatprep.subr.mxu1 %v3177_v57  ;;  %v2563_v1 = vld [vmem:[%s4096_s3 + $0x220] sm:$0xff]  ;;  %v2590_v29 = vld [vmem:[%s4096_s3 + $0x2d8] sm:$0xff] }
 0x19a   : > { %v1480_v21 = vadd.f32 %v1479_v7, %v1478_v9  ;;  %v1475_v12 = vadd.f32 %v1474_v10, %v1473_v25  ;;  %3008 = vmatpush3.msra.mxu1 %v2501_v8  ;;  %v2565_v25 = vld [vmem:[%s4096_s3 + $0x230] sm:$0xff]  ;;  %v2564_v9 = vld [vmem:[%s4096_s3 + $0x228] sm:$0xff]  ;;  %v2559_v8 = vld [vmem:[%s4096_s3 + $0x200] sm:$0xff] }
 0x19b   : > { %3009 = vmatprep.subr.mxu1 %v3177_v57  ;;  %v2560_v7 = vld [vmem:[%s4096_s3 + $0x208] sm:$0xff]  ;;  %v2594_v10 = vld [vmem:[%s4096_s3 + $0x2f8] sm:$0xff] }
 0x19c   : > { %v1481_v13 = vrot.slane %v1480_v21, 2  ;;  %v1508_v15 = vmul.f32 0.03125, %v1475_v12  ;;  %3010 = vmatpush3.msra.mxu1 %v2500_v11  ;;  %v2592_v11 = vld [vmem:[%s4096_s3 + $0x2e8] sm:$0xff]  ;;  %v2591_v12 = vld [vmem:[%s4096_s3 + $0x2e0] sm:$0xff] }
 0x19d   : > { %3011 = vmatprep.subr.mxu1 %v3177_v57 }
 0x19e   : > { %v1482_v16 = vadd.f32 %v1481_v13, %v1480_v21  ;;  %v3749_v18 = vsel %vm1541_vm5, %v1508_v15, %v3637_v56  ;;  %3012 = vmatpush3.msra.mxu1 %v2499_v14  ;;  %v2532_v56 = vld [vmem:[%s4096_s3 + $0x168] sm:$0xff]  ;;  %v2593_v21 = vld [vmem:[%s4096_s3 + $0x2f0] sm:$0xff]  ;;  %v2587_v15 = vld [vmem:[%s4096_s3 + $0x2c0] sm:$0xff] }
 0x19f   : > { %3014 = vmatmul.mubr.f32.vlgmr.msra.gmra.mxu1 %v1679_v20  ;;  %3016 = vmatprep.subr.mxu1 %v3177_v57  ;;  %v2589_v13 = vld [vmem:[%s4096_s3 + $0x2d0] sm:$0xff]  ;;  %v2588_v14 = vld [vmem:[%s4096_s3 + $0x2c8] sm:$0xff]  ;;  %v2583_v20 = vld [vmem:[%s4096_s3 + $0x2a0] sm:$0xff] }
 0x1a0   : > { %v1483_v54 = vrot.slane %v1482_v16, 1  ;;  %3017 = vmatpush3.msra.mxu1 %v2534_v17  ;;  %3048 = vmatprep.mubr.msk.f32.mxu1 %vm3178_vm2, %v3177_v57  ;;  %v2585_v17 = vld [vmem:[%s4096_s3 + $0x2b0] sm:$0xff] }
 0x1a1   : > { %3018 = vmatprep.subr.mxu1 %v3177_v57 }
 0x1a2   : > { %v1484_v23 = vadd.f32 %v1483_v54, %v1482_v16  ;;  %3019 = vmatpush3.msra.mxu1 %v2533_v22  ;;  %v2586_v16 = vld [vmem:[%s4096_s3 + $0x2b8] sm:$0xff]  ;;  %v2581_v54 = vld [vmem:[%s4096_s3 + $0x290] sm:$0xff] }
 0x1a3   : > { %3020 = vmatprep.subr.mxu1 %v3177_v57  ;;  %v2582_v22 = vld [vmem:[%s4096_s3 + $0x298] sm:$0xff] }
 0x1a4   : > { %v1509_v40 = vmul.f32 0.03125, %v1484_v23  ;;  %3021 = vmatpush3.msra.mxu1 %v2532_v56  ;;  %v2580_v56 = vld [vmem:[%s4096_s3 + $0x288] sm:$0xff]  ;;  %v2579_v23 = vld [vmem:[%s4096_s3 + $0x280] sm:$0xff] }
 0x1a5   : > { %3022 = vmatprep.subr.mxu1 %v3177_v57 }
 0x1a6   : > { %v3773_v5 = vsel %vm1541_vm5, %v1509_v40, %v3647_v19  ;;  %3023 = vmatpush3.msra.mxu1 %v2531_v35  ;;  %v2527_v19 = vld [vmem:[%s4096_s3 + $0x140] sm:$0xff]  ;;  %v3179_v35 = vmov 1966171168  }
 0x1a7   : > { %3024 = vmatprep.subr.mxu1 %v3177_v57  ;;  %v1617_v40 = vunpack.c.l.s4 %v3179_v35 }
 0x1a8   : > { %3025 = vmatpush3.msra.mxu1 %v2530_v24  ;;  %v1619_v24 = vlaneseq }
 0x1a9   : > { %3026 = vmatprep.subr.mxu1 %v3177_v57 }
 0x1aa   : > { %3027 = vmatpush3.msra.mxu1 %v2529_v26  ;;  %v1618_v26 = vunpack.c.0.s8 %v1617_v40 }
 0x1ab   : > { %3028 = vmatprep.subr.mxu1 %v3177_v57 }
 0x1ac   : > { %3029 = vmatpush3.msra.mxu1 %v2528_v49  ;;  %v1620_v49 = vshrl.u32 %v1619_v24, 7 }
 0x1ad   : > { %3030 = vmatprep.subr.mxu1 %v3177_v57 }
 0x1ae   : > { %3031 = vmatpush3.msra.mxu1 %v2527_v19  ;;  %v2496_v19 = vld [vmem:[%s4097_s4] ss:$0 sm:$0xff] }
 0x1af   : > { %3032 = vmatprep.subr.mxu1 %v3177_v57 }
 0x1b0   : > { %3033 = vmatpush3.msra.mxu1 %v2526_v27 }
 0x1b1   : > { %3034 = vmatprep.subr.mxu1 %v3177_v57 }
 0x1b2   : > { %3035 = vmatpush3.msra.mxu1 %v2525_v28 }
 0x1b3   : > { %3036 = vmatprep.subr.mxu1 %v3177_v57 }
 0x1b4   : > { %3037 = vmatpush3.msra.mxu1 %v2524_v0  ;;  %v4026_v0 = vsub.s32 %v1618_v26, %v1620_v49 }
 0x1b5   : > { %3038 = vmatprep.subr.mxu1 %v3177_v57 }
 0x1b6   : > { %3039 = vmatpush3.msra.mxu1 %v2523_v30 }
 0x1b7   : > { %3040 = vmatprep.subr.mxu1 %v3177_v57 }
 0x1b8   : > { %3041 = vmatpush3.msra.mxu1 %v2522_v31 }
 0x1b9   : > { %3042 = vmatprep.subr.mxu1 %v3177_v57 }
 0x1ba   : > { %3043 = vmatpush3.msra.mxu1 %v2521_v32 }
 0x1bb   : > { %3044 = vmatprep.subr.mxu1 %v3177_v57 }
 0x1bc   : > { %3045 = vmatpush3.msra.mxu1 %v2520_v46 }
 0x1bd   : > { %3046 = vmatprep.subr.mxu1 %v3177_v57 }
 0x1be   : > { %3047 = vmatpush3.msra.mxu1 %v2519_v34 }
 0x1bf   : > { %3049 = vmatmul.mubr.f32.vlgmr.msra.gmra.mxu1 %v3708_v47  ;;  %3051 = vmatprep.subr.mxu1 %v3177_v57  ;;  %v2545_v47 = vld [vmem:[%s4096_s3 + $0x1b0] sm:$0xff] }
 0x1c0   : > { %3052 = vmatpush3.msra.mxu1 %v2554_v36  ;;  %3083 = vmatprep.mubr.msk.f32.mxu1 %vm3178_vm2, %v3177_v57 }
 0x1c1   : > { %3053 = vmatprep.subr.mxu1 %v3177_v57 }
 0x1c2   : > { %3054 = vmatpush3.msra.mxu1 %v2553_v37  ;;  %v2516_v37 = vld [vmem:[%s4097_s4 + $0x1] ss:$0 sm:$0xff] }
 0x1c3   : > { %3055 = vmatprep.subr.mxu1 %v3177_v57 }
 0x1c4   : > { %3056 = vmatpush3.msra.mxu1 %v2552_v53 }
 0x1c5   : > { %3057 = vmatprep.subr.mxu1 %v3177_v57 }
 0x1c6   : > { %3058 = vmatpush3.msra.mxu1 %v2551_v41 }
 0x1c7   : > { %3059 = vmatprep.subr.mxu1 %v3177_v57 }
 0x1c8   : > { %3060 = vmatpush3.msra.mxu1 %v2550_v42 }
 0x1c9   : > { %3061 = vmatprep.subr.mxu1 %v3177_v57 }
 0x1ca   : > { %3062 = vmatpush3.msra.mxu1 %v2549_v43 }
 0x1cb   : > { %3063 = vmatprep.subr.mxu1 %v3177_v57 }
 0x1cc   : > { %3064 = vmatpush3.msra.mxu1 %v2548_v44 }
 0x1cd   : > { %3065 = vmatprep.subr.mxu1 %v3177_v57 }
 0x1ce   : > { %3066 = vmatpush3.msra.mxu1 %v2547_v33 }
 0x1cf   : > { %3067 = vmatprep.subr.mxu1 %v3177_v57 }
 0x1d0   : > { %3068 = vmatpush3.msra.mxu1 %v2546_v45 }
 0x1d1   : > { %3069 = vmatprep.subr.mxu1 %v3177_v57 }
 0x1d2   : > { %3070 = vmatpush3.msra.mxu1 %v2545_v47 }
 0x1d3   : > { %3071 = vmatprep.subr.mxu1 %v3177_v57 }
 0x1d4   : > { %3072 = vmatpush3.msra.mxu1 %v2544_v50 }
 0x1d5   : > { %3073 = vmatprep.subr.mxu1 %v3177_v57 }
 0x1d6   : > { %3074 = vmatpush3.msra.mxu1 %v2543_v51 }
 0x1d7   : > { %3075 = vmatprep.subr.mxu1 %v3177_v57 }
 0x1d8   : > { %3076 = vmatpush3.msra.mxu1 %v2542_v52  ;;  %v2536_v52 = vld [vmem:[%s4097_s4 + $0x2] ss:$0 sm:$0xff] }
 0x1d9   : > { %3077 = vmatprep.subr.mxu1 %v3177_v57 }
 0x1da   : > { %3078 = vmatpush3.msra.mxu1 %v2541_v63 }
 0x1db   : > { %3079 = vmatprep.subr.mxu1 %v3177_v57 }
 0x1dc   : > { %3080 = vmatpush3.msra.mxu1 %v2540_v4 }
 0x1dd   : > { %3081 = vmatprep.subr.mxu1 %v3177_v57 }
 0x1de   : > { %3082 = vmatpush3.msra.mxu1 %v2539_v55 }
 0x1df   : > { %3084 = vmatmul.mubr.f32.vlgmr.msra.gmra.mxu1 %v3729_v3  ;;  %3086 = vmatprep.subr.mxu1 %v3177_v57  ;;  %v2561_v3 = vld [vmem:[%s4096_s3 + $0x210] sm:$0xff] }
 0x1e0   : > { %3087 = vmatpush3.msra.mxu1 %v2574_v48  ;;  %3118 = vmatprep.mubr.msk.f32.mxu1 %vm3178_vm2, %v3177_v57 }
 0x1e1   : > { %3088 = vmatprep.subr.mxu1 %v3177_v57 }
 0x1e2   : > { %3089 = vmatpush3.msra.mxu1 %v2573_v58 }
 0x1e3   : > { %3090 = vmatprep.subr.mxu1 %v3177_v57 }
 0x1e4   : > { %3091 = vmatpush3.msra.mxu1 %v2572_v6 }
 0x1e5   : > { %3092 = vmatprep.subr.mxu1 %v3177_v57 }
 0x1e6   : > { %3093 = vmatpush3.msra.mxu1 %v2571_v38 }
 0x1e7   : > { %3094 = vmatprep.subr.mxu1 %v3177_v57 }
 0x1e8   : > { %3095 = vmatpush3.msra.mxu1 %v2570_v62 }
 0x1e9   : > { %3096 = vmatprep.subr.mxu1 %v3177_v57 }
 0x1ea   : > { %3097 = vmatpush3.msra.mxu1 %v2569_v59 }
 0x1eb   : > { %3098 = vmatprep.subr.mxu1 %v3177_v57 }
 0x1ec   : > { %3099 = vmatpush3.msra.mxu1 %v2568_v39 }
 0x1ed   : > { %3100 = vmatprep.subr.mxu1 %v3177_v57 }
 0x1ee   : > { %3101 = vmatpush3.msra.mxu1 %v2567_v60  ;;  %v2556_v60 = vld [vmem:[%s4097_s4 + $0x3] ss:$0 sm:$0xff] }
 0x1ef   : > { %3102 = vmatprep.subr.mxu1 %v3177_v57 }
 0x1f0   : > { %3103 = vmatpush3.msra.mxu1 %v2566_v61 }
 0x1f1   : > { %3104 = vmatprep.subr.mxu1 %v3177_v57 }
 0x1f2   : > { %3105 = vmatpush3.msra.mxu1 %v2565_v25 }
 0x1f3   : > { %3106 = vmatprep.subr.mxu1 %v3177_v57 }
 0x1f4   : > { %3107 = vmatpush3.msra.mxu1 %v2564_v9 }
 0x1f5   : > { %3108 = vmatprep.subr.mxu1 %v3177_v57 }
 0x1f6   : > { %3109 = vmatpush3.msra.mxu1 %v2563_v1 }
 0x1f7   : > { %3110 = vmatprep.subr.mxu1 %v3177_v57 }
 0x1f8   : > { %3111 = vmatpush3.msra.mxu1 %v2562_v2 }
 0x1f9   : > { %3112 = vmatprep.subr.mxu1 %v3177_v57 }
 0x1fa   : > { %3113 = vmatpush3.msra.mxu1 %v2561_v3 }
 0x1fb   : > { %3114 = vmatprep.subr.mxu1 %v3177_v57 }
 0x1fc   : > { %3115 = vmatpush3.msra.mxu1 %v2560_v7 }
 0x1fd   : > { %3116 = vmatprep.subr.mxu1 %v3177_v57 }
 0x1fe   : > { %3117 = vmatpush3.msra.mxu1 %v2559_v8 }
 0x1ff   : > { %3119 = vmatmul.mubr.f32.vlgmr.msra.gmra.mxu1 %v3749_v18  ;;  %3121 = vmatprep.subr.mxu1 %v3177_v57  ;;  %v2584_v18 = vld [vmem:[%s4096_s3 + $0x2a8] sm:$0xff] }
 0x200   : > { %3122 = vmatpush3.msra.mxu1 %v2594_v10  ;;  %3153 = vmatprep.mubr.msk.f32.mxu1 %vm3178_vm2, %v3177_v57 }
 0x201   : > { %3123 = vmatprep.subr.mxu1 %v3177_v57 }
 0x202   : > { %3124 = vmatpush3.msra.mxu1 %v2593_v21 }
 0x203   : > { %3125 = vmatprep.subr.mxu1 %v3177_v57 }
 0x204   : > { %3126 = vmatpush3.msra.mxu1 %v2592_v11  ;;  %v2576_v11 = vld [vmem:[%s4097_s4 + $0x4] ss:$0 sm:$0xff] }
 0x205   : > { %3127 = vmatprep.subr.mxu1 %v3177_v57 }
 0x206   : > { %3128 = vmatpush3.msra.mxu1 %v2591_v12 }
 0x207   : > { %3129 = vmatprep.subr.mxu1 %v3177_v57 }
 0x208   : > { %3130 = vmatpush3.msra.mxu1 %v2590_v29 }
 0x209   : > { %3131 = vmatprep.subr.mxu1 %v3177_v57 }
 0x20a   : > { %3132 = vmatpush3.msra.mxu1 %v2589_v13 }
 0x20b   : > { %3133 = vmatprep.subr.mxu1 %v3177_v57 }
 0x20c   : > { %3134 = vmatpush3.msra.mxu1 %v2588_v14 }
 0x20d   : > { %3135 = vmatprep.subr.mxu1 %v3177_v57 }
 0x20e   : > { %3136 = vmatpush3.msra.mxu1 %v2587_v15 }
 0x20f   : > { %3137 = vmatprep.subr.mxu1 %v3177_v57 }
 0x210   : > { %3138 = vmatpush3.msra.mxu1 %v2586_v16 }
 0x211   : > { %3139 = vmatprep.subr.mxu1 %v3177_v57 }
 0x212   : > { %3140 = vmatpush3.msra.mxu1 %v2585_v17 }
 0x213   : > { %3141 = vmatprep.subr.mxu1 %v3177_v57 }
 0x214   : > { %3142 = vmatpush3.msra.mxu1 %v2584_v18 }
 0x215   : > { %3143 = vmatprep.subr.mxu1 %v3177_v57 }
 0x216   : > { %3144 = vmatpush3.msra.mxu1 %v2583_v20 }
 0x217   : > { %3145 = vmatprep.subr.mxu1 %v3177_v57 }
 0x218   : > { %3146 = vmatpush3.msra.mxu1 %v2582_v22 }
 0x219   : > { %3147 = vmatprep.subr.mxu1 %v3177_v57 }
 0x21a   : > { %3148 = vmatpush3.msra.mxu1 %v2581_v54  ;;  %v2596_v54 = vld [vmem:[%s4097_s4 + $0x5] ss:$0 sm:$0xff] }
 0x21b   : > { %3149 = vmatprep.subr.mxu1 %v3177_v57 }
 0x21c   : > { %3150 = vmatpush3.msra.mxu1 %v2580_v56 }
 0x21d   : > { %3151 = vmatprep.subr.mxu1 %v3177_v57 }
 0x21e   : > { %3152 = vmatpush3.msra.mxu1 %v2579_v23 }
 0x21f   : > { %3154 = vmatmul.mubr.f32.vlgmr.msra.gmra.mxu1 %v3773_v5 }
 0x23f   : > { %v1610_v27 = vpop.f32.mrf.mxu1 }
 0x240   : > { %v1611_v28 = vadd.f32 %v2496_v19, %v1610_v27 }
 0x241   : > { %v2980_v30 = vpop.f32.mrf.mxu1 }
 0x242   : > { %v1614_v31 = vmax.f32 %v1611_v28, 0.0 }
 0x244   : > { %v1622_v57 = vrot.slane %v1614_v31, %v4026_v0 }
 0x246   : > { %v1623_v5 = vcombine.high %v1622_v57, %v1622_v57  ;;  %v1630_v32 = vrot.slane %v1622_v57, %v4026_v0  ;;  %2497 = vst.sshfl [vmem:[%s4031_s20] sm:$0x1 pattern:$0x73625140] %v1622_v57 }
 0x248   : > { %v1637_v46 = vrot.slane %v1623_v5, %v4026_v0  ;;  %v1638_v34 = vcombine.high %v1630_v32, %v1630_v32  ;;  %2498 = vst.sshfl [vmem:[%s4031_s20 + $0x8] sm:$0x1 pattern:$0x73625140] %v1623_v5 }
 0x24a   : > { %v1639_v36 = vcombine.high %v1637_v46, %v1637_v46  ;;  %1646 = vst [vmem:[%s4031_s20 + $0x10] sm:$0x1] %v1638_v34 }
 0x24c   : > { %1647 = vst [vmem:[%s4031_s20 + $0x18] sm:$0x1] %v1639_v36 }
 0x25f   : > { %v1747_v53 = vpop.f32.mrf.mxu1 }
 0x260   : > { %v1748_v41 = vadd.f32 %v2516_v37, %v1747_v53 }
 0x261   : > { %v3015_v42 = vpop.f32.mrf.mxu1 }
 0x262   : > { %v1751_v43 = vmax.f32 %v1748_v41, 0.0 }
 0x264   : > { %v1759_v44 = vrot.slane %v1751_v43, %v4026_v0 }
 0x266   : > { %v1760_v33 = vcombine.high %v1759_v44, %v1759_v44  ;;  %v1767_v45 = vrot.slane %v1759_v44, %v4026_v0  ;;  %2517 = vst.sshfl [vmem:[%s4031_s20 + $0x1] sm:$0x1 pattern:$0x73625140] %v1759_v44 }
 0x268   : > { %v1774_v47 = vrot.slane %v1760_v33, %v4026_v0  ;;  %v1775_v50 = vcombine.high %v1767_v45, %v1767_v45  ;;  %2518 = vst.sshfl [vmem:[%s4031_s20 + $0x9] sm:$0x1 pattern:$0x73625140] %v1760_v33 }
 0x26a   : > { %v1776_v51 = vcombine.high %v1774_v47, %v1774_v47  ;;  %1783 = vst [vmem:[%s4031_s20 + $0x11] sm:$0x1] %v1775_v50 }
 0x26c   : > { %1784 = vst [vmem:[%s4031_s20 + $0x19] sm:$0x1] %v1776_v51 }
 0x27f   : > { %v1884_v63 = vpop.f32.mrf.mxu1 }
 0x280   : > { %v1885_v4 = vadd.f32 %v2536_v52, %v1884_v63 }
 0x281   : > { %v3050_v55 = vpop.f32.mrf.mxu1 }
 0x282   : > { %v1888_v48 = vmax.f32 %v1885_v4, 0.0 }
 0x284   : > { %v1896_v58 = vrot.slane %v1888_v48, %v4026_v0 }
 0x286   : > { %v1897_v6 = vcombine.high %v1896_v58, %v1896_v58  ;;  %v1904_v38 = vrot.slane %v1896_v58, %v4026_v0  ;;  %2537 = vst.sshfl [vmem:[%s4031_s20 + $0x2] sm:$0x1 pattern:$0x73625140] %v1896_v58 }
 0x288   : > { %v1911_v62 = vrot.slane %v1897_v6, %v4026_v0  ;;  %v1912_v59 = vcombine.high %v1904_v38, %v1904_v38  ;;  %2538 = vst.sshfl [vmem:[%s4031_s20 + $0xa] sm:$0x1 pattern:$0x73625140] %v1897_v6 }
 0x28a   : > { %v1913_v39 = vcombine.high %v1911_v62, %v1911_v62  ;;  %1920 = vst [vmem:[%s4031_s20 + $0x12] sm:$0x1] %v1912_v59 }
 0x28c   : > { %1921 = vst [vmem:[%s4031_s20 + $0x1a] sm:$0x1] %v1913_v39 }
 0x29f   : > { %v2021_v61 = vpop.f32.mrf.mxu1 }
 0x2a0   : > { %v2022_v25 = vadd.f32 %v2556_v60, %v2021_v61 }
 0x2a1   : > { %v3085_v9 = vpop.f32.mrf.mxu1 }
 0x2a2   : > { %v2025_v1 = vmax.f32 %v2022_v25, 0.0 }
 0x2a4   : > { %v2033_v2 = vrot.slane %v2025_v1, %v4026_v0 }
 0x2a6   : > { %v2034_v3 = vcombine.high %v2033_v2, %v2033_v2  ;;  %v2041_v7 = vrot.slane %v2033_v2, %v4026_v0  ;;  %2557 = vst.sshfl [vmem:[%s4031_s20 + $0x3] sm:$0x1 pattern:$0x73625140] %v2033_v2 }
 0x2a8   : > { %v2048_v8 = vrot.slane %v2034_v3, %v4026_v0  ;;  %v2049_v10 = vcombine.high %v2041_v7, %v2041_v7  ;;  %2558 = vst.sshfl [vmem:[%s4031_s20 + $0xb] sm:$0x1 pattern:$0x73625140] %v2034_v3 }
 0x2aa   : > { %v2050_v21 = vcombine.high %v2048_v8, %v2048_v8  ;;  %2057 = vst [vmem:[%s4031_s20 + $0x13] sm:$0x1] %v2049_v10 }
 0x2ac   : > { %2058 = vst [vmem:[%s4031_s20 + $0x1b] sm:$0x1] %v2050_v21 }
 0x2bf   : > { %v2158_v12 = vpop.f32.mrf.mxu1 }
 0x2c0   : > { %v2159_v29 = vadd.f32 %v2576_v11, %v2158_v12 }
 0x2c1   : > { %v3120_v13 = vpop.f32.mrf.mxu1 }
 0x2c2   : > { %v2162_v14 = vmax.f32 %v2159_v29, 0.0 }
 0x2c4   : > { %v2170_v15 = vrot.slane %v2162_v14, %v4026_v0 }
 0x2c6   : > { %v2171_v16 = vcombine.high %v2170_v15, %v2170_v15  ;;  %v2178_v17 = vrot.slane %v2170_v15, %v4026_v0  ;;  %2577 = vst.sshfl [vmem:[%s4031_s20 + $0x4] sm:$0x1 pattern:$0x73625140] %v2170_v15 }
 0x2c8   : > { %v2185_v18 = vrot.slane %v2171_v16, %v4026_v0  ;;  %v2186_v20 = vcombine.high %v2178_v17, %v2178_v17  ;;  %2578 = vst.sshfl [vmem:[%s4031_s20 + $0xc] sm:$0x1 pattern:$0x73625140] %v2171_v16 }
 0x2ca   : > { %v2187_v22 = vcombine.high %v2185_v18, %v2185_v18  ;;  %2194 = vst [vmem:[%s4031_s20 + $0x14] sm:$0x1] %v2186_v20 }
 0x2cc   : > { %2195 = vst [vmem:[%s4031_s20 + $0x1c] sm:$0x1] %v2187_v22 }
 0x2df   : > { %v2295_v56 = vpop.f32.mrf.mxu1 }
 0x2e0   : > { %v2296_v23 = vadd.f32 %v2596_v54, %v2295_v56 }
 0x2e1   : > { %v3155_v35 = vpop.f32.mrf.mxu1 }
 0x2e2   : > { %v2299_v40 = vmax.f32 %v2296_v23, 0.0 }
 0x2e4   : > { %v2307_v24 = vrot.slane %v2299_v40, %v4026_v0 }
 0x2e6   : > { %v2308_v26 = vcombine.high %v2307_v24, %v2307_v24  ;;  %v2315_v49 = vrot.slane %v2307_v24, %v4026_v0  ;;  %2597 = vst.sshfl [vmem:[%s4031_s20 + $0x5] sm:$0x1 pattern:$0x73625140] %v2307_v24 }
 0x2e8   : > { %v2322_v19 = vrot.slane %v2308_v26, %v4026_v0  ;;  %v2323_v27 = vcombine.high %v2315_v49, %v2315_v49  ;;  %2598 = vst.sshfl [vmem:[%s4031_s20 + $0xd] sm:$0x1 pattern:$0x73625140] %v2308_v26 }
 0x2ea   : > { %v2324_v28 = vcombine.high %v2322_v19, %v2322_v19  ;;  %2331 = vst [vmem:[%s4031_s20 + $0x15] sm:$0x1] %v2323_v27 }
 0x2ec   : > { %2332 = vst [vmem:[%s4031_s20 + $0x1d] sm:$0x1] %v2324_v28 }
 0x2ed PF: > { %s15_s18 = sadd.s32 1, %s3175_s18  }
 0x2ee   : > { %p12_p4 = scmp.ge.s32.totalorder %s15_s18, 4  }
 0x2f0   :  { %14 = sbr.rel (!%p12_p4) target bundleno = 1 (0x1), region = 80 }

</bundles_post_ra>
